<compile_context>
chip_gen: v7x
topology: tpu7x:2x2x1
jax: 0.10.0
libtpu: 0.0.40
codegen_flags: <defaults>
</compile_context>

<pallas_src>
import jax
import jax.numpy as jnp
from jax import lax
from jax.experimental import pallas as pl
from jax.experimental.pallas import tpu as pltpu


# ---------------------------------------------------------------------------
# Pallas kernels
# ---------------------------------------------------------------------------
def _conv_relu_pool_kernel(p_ref, w_ref, b_ref, o_ref):
    """p: [4*M, K] im2col patches (pool-corner-major rows, bf16),
    w: [K, OC] (bf16), b: [1, OC] (f32).
    Computes relu(p @ w + b) in f32 and max-reduces the 4 corner row-blocks
    -> o: [M, OC]  (== relu(maxpool2x2(conv)))."""
    m = o_ref.shape[0]
    acc = jnp.dot(p_ref[...].astype(jnp.bfloat16),
                  w_ref[...].astype(jnp.bfloat16),
                  preferred_element_type=jnp.float32)            # MXU, f32 accumulate
    acc = jnp.maximum(acc + b_ref[...], 0.0)                     # bias + ReLU in f32
    pooled = jnp.maximum(jnp.maximum(acc[0 * m:1 * m], acc[1 * m:2 * m]),
                         jnp.maximum(acc[2 * m:3 * m], acc[3 * m:4 * m]))
    o_ref[...] = pooled.astype(o_ref.dtype)


def _fc_stack_kernel(h_ref, w1_ref, b1_ref, w2_ref, b2_ref, w3_ref, b3_ref, o_ref):
    """fc1+ReLU -> fc2+ReLU -> fc3, all chained in one launch (weights resident
    in VMEM, pre-cast to bf16; f32 accumulation and epilogues)."""
    def dense(x, w_ref, b_ref):
        return jnp.dot(x.astype(jnp.bfloat16), w_ref[...].astype(jnp.bfloat16),
                       preferred_element_type=jnp.float32) + b_ref[...]
    y = jnp.maximum(dense(h_ref[...], w1_ref, b1_ref), 0.0)
    y = jnp.maximum(dense(y, w2_ref, b2_ref), 0.0)
    o_ref[...] = dense(y, w3_ref, b3_ref).astype(o_ref.dtype)


# ---------------------------------------------------------------------------
# pallas_call wrappers
# ---------------------------------------------------------------------------
def _full_spec(shape):
    assert len(shape) == 2
    return pl.BlockSpec(shape, lambda i: (0, 0))


def _bytes(a):
    return int(a.size) * jnp.dtype(a.dtype).itemsize


def _pallas_conv_relu_pool(patches, w_m, b_row, out_dtype):
    M4, K = patches.shape
    _, OC = w_m.shape
    M = M4 // 4
    out_bytes = M * OC * jnp.dtype(out_dtype).itemsize
    return pl.pallas_call(
        _conv_relu_pool_kernel,
        out_shape=jax.ShapeDtypeStruct((M, OC), out_dtype),
        grid=(1,),
        in_specs=[_full_spec((M4, K)), _full_spec((K, OC)), _full_spec((1, OC))],
        out_specs=_full_spec((M, OC)),
        compiler_params=pltpu.CompilerParams(dimension_semantics=("arbitrary",)),
        cost_estimate=pl.CostEstimate(
            flops=2 * M4 * K * OC, transcendentals=0,
            bytes_accessed=_bytes(patches) + _bytes(w_m) + _bytes(b_row) + out_bytes),
    )(patches, w_m, b_row)


def fc_stack(h, w1, b1, w2, b2, w3, b3):
    B, D = h.shape
    N1, N2, N3 = w1.shape[1], w2.shape[1], w3.shape[1]
    args = (h, w1, b1, w2, b2, w3, b3)
    return pl.pallas_call(
        _fc_stack_kernel,
        out_shape=jax.ShapeDtypeStruct((B, N3), jnp.float32),
        grid=(1,),
        in_specs=[_full_spec(a.shape) for a in args],
        out_specs=_full_spec((B, N3)),
        compiler_params=pltpu.CompilerParams(dimension_semantics=("arbitrary",)),
        cost_estimate=pl.CostEstimate(
            flops=2 * B * (D * N1 + N1 * N2 + N2 * N3), transcendentals=0,
            bytes_accessed=sum(_bytes(a) for a in args) + 4 * B * N3),
    )(*args)


# ---------------------------------------------------------------------------
# Glue: im2col with pool-corner-major row order (tiny, stays in XLA)
# ---------------------------------------------------------------------------
def _im2col_pool_rows(x_nhwc, kh, kw):
    """Valid-conv im2col with rows ordered (pool_dy, pool_dx, b, ph, pw) and
    features ordered (ki, kj, c).  Matches prepare_params' weight repack and
    lets the kernel fuse the 2x2 max-pool as a max over 4 contiguous row blocks."""
    B, H, W, C = x_nhwc.shape
    OH, OW = H - kh + 1, W - kw + 1
    PH, PW = OH // 2, OW // 2
    taps = [x_nhwc[:, ki:ki + OH, kj:kj + OW, :]
            for ki in range(kh) for kj in range(kw)]              # each [B, OH, OW, C]
    pat = jnp.stack(taps, axis=3)                                 # [B, OH, OW, T, C]
    pat = pat.reshape(B, PH, 2, PW, 2, kh * kw, C)                # oh=(ph,dy), ow=(pw,dx)
    pat = pat.transpose(2, 4, 0, 1, 3, 5, 6)                      # [dy, dx, B, PH, PW, T, C]
    return pat.reshape(4 * B * PH * PW, kh * kw * C)


def conv_relu_pool_layer(x_nhwc, w_m, b_row, kh, kw, out_dtype):
    B, H, W, _ = x_nhwc.shape
    PH, PW = (H - kh + 1) // 2, (W - kw + 1) // 2
    OC = w_m.shape[1]
    pat = _im2col_pool_rows(x_nhwc.astype(jnp.bfloat16), kh, kw)  # bf16 patches
    out = _pallas_conv_relu_pool(pat, w_m, b_row, out_dtype)      # [B*PH*PW, OC]
    return out.reshape(B, PH, PW, OC)                             # channel-last


# ---------------------------------------------------------------------------
# LeNet forward
# ---------------------------------------------------------------------------
def lenet_forward(x, p):
    """x: [B, 1, 28, 28] (NCHW, like the PyTorch module).  Returns (logits, h)."""
    B = x.shape[0]
    x_nhwc = jnp.transpose(x, (0, 2, 3, 1))                       # free: C == 1
    a1 = conv_relu_pool_layer(x_nhwc, p["conv1_wm"], p["conv1_b"], 5, 5,
                              jnp.bfloat16)                       # [B,12,12,6] bf16
    a2 = conv_relu_pool_layer(a1, p["conv2_wm"], p["conv2_b"], 5, 5,
                              jnp.float32)                        # [B,4,4,16]  f32
    # h in torch's x.view(B, -1) order (C, H, W) -- a 2 KB reorder.
    h = jnp.transpose(a2, (0, 3, 1, 2)).reshape(B, -1)            # [B, 256]
    logits = fc_stack(h, p["fc1_wm"], p["fc1_b"], p["fc2_wm"], p["fc2_b"],
                      p["fc3_wm"], p["fc3_b"])
    return logits, h


# ---------------------------------------------------------------------------
# Parameters
# ---------------------------------------------------------------------------
def init_params(key, output_dim):
    ks = jax.random.split(key, 10)
    f32 = jnp.float32

    def rnd(k, shape, scale):
        return (scale * jax.random.normal(k, shape, f32)).astype(f32)

    return {
        "conv1_w": rnd(ks[0], (6, 1, 5, 5), 0.2),
        "conv1_b": rnd(ks[1], (6,), 0.1),
        "conv2_w": rnd(ks[2], (16, 6, 5, 5), 0.08),
        "conv2_b": rnd(ks[3], (16,), 0.1),
        "fc1_w":   rnd(ks[4], (120, 256), 0.06),
        "fc1_b":   rnd(ks[5], (120,), 0.05),
        "fc2_w":   rnd(ks[6], (84, 120), 0.09),
        "fc2_b":   rnd(ks[7], (84,), 0.05),
        "fc3_w":   rnd(ks[8], (output_dim, 84), 0.1),
        "fc3_b":   rnd(ks[9], (output_dim,), 0.05),
    }


def prepare_params(raw):
    """One-time repack (outside the jitted forward): conv weights -> [KH*KW*C, OC]
    matching the im2col (ki, kj, c) feature order; FC weights pre-transposed to
    [in, out]; all weights pre-cast to bf16 (MXU inputs); biases as f32 [1, N]."""
    bf16 = jnp.bfloat16

    def conv_w(w):
        oc, c, kh, kw = w.shape
        return jnp.transpose(w, (2, 3, 1, 0)).reshape(kh * kw * c, oc).astype(bf16)

    return {
        "conv1_wm": conv_w(raw["conv1_w"]), "conv1_b": raw["conv1_b"].reshape(1, -1),
        "conv2_wm": conv_w(raw["conv2_w"]), "conv2_b": raw["conv2_b"].reshape(1, -1),
        "fc1_wm": raw["fc1_w"].T.astype(bf16), "fc1_b": raw["fc1_b"].reshape(1, -1),
        "fc2_wm": raw["fc2_w"].T.astype(bf16), "fc2_b": raw["fc2_b"].reshape(1, -1),
        "fc3_wm": raw["fc3_w"].T.astype(bf16), "fc3_b": raw["fc3_b"].reshape(1, -1),
    }


# ---------------------------------------------------------------------------
# Plain-JAX f32 reference (for a loose sanity check only)
# ---------------------------------------------------------------------------
def lenet_reference(x, raw):
    hp = lax.Precision.HIGHEST

    def conv(y, w, b):
        y = lax.conv_general_dilated(y, w, (1, 1), "VALID",
                                     dimension_numbers=("NCHW", "OIHW", "NCHW"),
                                     precision=hp)
        return y + b.reshape(1, -1, 1, 1)

    def pool_relu(y):
        y = lax.reduce_window(y, -jnp.inf, lax.max, (1, 1, 2, 2), (1, 1, 2, 2), "VALID")
        return jnp.maximum(y, 0.0)

    y = pool_relu(conv(x, raw["conv1_w"], raw["conv1_b"]))
    y = pool_relu(conv(y, raw["conv2_w"], raw["conv2_b"]))
    h = y.reshape(y.shape[0], -1)
    z = jnp.maximum(jnp.dot(h, raw["fc1_w"].T, precision=hp) + raw["fc1_b"], 0.0)
    z = jnp.maximum(jnp.dot(z, raw["fc2_w"].T, precision=hp) + raw["fc2_b"], 0.0)
    z = jnp.dot(z, raw["fc3_w"].T, precision=hp) + raw["fc3_b"]
    return z, h


if __name__ == "__main__":
    OUTPUT_DIM = 10
    key = jax.random.PRNGKey(0)
    pkey, xkey = jax.random.split(key)
    raw = init_params(pkey, OUTPUT_DIM)
    params = prepare_params(raw)

    # MNIST-style input: fc_1 in-features (256 = 16*4*4) imply 1x28x28.
    x = jax.random.normal(xkey, (2, 1, 28, 28), jnp.float32)

    logits, h = jax.jit(lenet_forward)(x, params)
    jax.block_until_ready((logits, h))

    assert logits.shape == (2, OUTPUT_DIM) and logits.dtype == jnp.float32
    assert h.shape == (2, 256) and h.dtype == jnp.float32
    assert bool(jnp.all(jnp.isfinite(logits))) and bool(jnp.all(jnp.isfinite(h)))

    # Loose check vs the f32 reference (kernels use bf16 MXU inputs with f32
    # accumulation, so allow a small drift; an ordering bug would be O(1) off).
    ref_logits, ref_h = jax.jit(lenet_reference)(x, raw)
    assert float(jnp.max(jnp.abs(h - ref_h))) < 0.2, "conv/pool path mismatch"
    assert float(jnp.max(jnp.abs(logits - ref_logits))) < 0.75, "fc path mismatch"
    print("KERNEL_OK")
</pallas_src>

<mosaic_0001>
module attributes {stable_mosaic.version = 11 : i64} {
  func.func @_conv_relu_pool_kernel(%arg0: i32, %arg1: memref<1152x25xbf16, #tpu.memory_space<vmem>>, %arg2: memref<25x6xbf16, #tpu.memory_space<vmem>>, %arg3: memref<1x6xf32, #tpu.memory_space<vmem>>, %arg4: memref<288x6xbf16, #tpu.memory_space<vmem>>) attributes {dimension_semantics = [#tpu.dimension_semantics<arbitrary>], iteration_bounds = array<i64: 1>, scalar_prefetch = 0 : i64, scratch_operands = 0 : i64, tpu.core_type = #tpu.core_type<tc>, window_params = [{pipeline_mode = #tpu.pipeline_mode<synchronous>, transform_indices = @transform_0, window_bounds = array<i64: 1152, 25>}, {pipeline_mode = #tpu.pipeline_mode<synchronous>, transform_indices = @transform_1, window_bounds = array<i64: 25, 6>}, {pipeline_mode = #tpu.pipeline_mode<synchronous>, transform_indices = @transform_2, window_bounds = array<i64: 1, 6>}, {pipeline_mode = #tpu.pipeline_mode<synchronous>, transform_indices = @transform_3, window_bounds = array<i64: 288, 6>}]} {
    %c0 = arith.constant 0 : index
    %c0_0 = arith.constant 0 : index
    %0 = vector.load %arg1[%c0, %c0_0] : memref<1152x25xbf16, #tpu.memory_space<vmem>>, vector<1152x25xbf16>
    %c0_1 = arith.constant 0 : index
    %c0_2 = arith.constant 0 : index
    %1 = vector.load %arg2[%c0_1, %c0_2] : memref<25x6xbf16, #tpu.memory_space<vmem>>, vector<25x6xbf16>
    %cst = arith.constant dense<0.000000e+00> : vector<1152x6xf32>
    %2 = tpu.matmul %0, %1, %cst {dimension_numbers = #tpu.dot_dimension_numbers<[1], [0], [0], [1], [0, 0, 1, 1], [], []>} : vector<1152x25xbf16>, vector<25x6xbf16>, vector<1152x6xf32> -> vector<1152x6xf32>
    %c0_3 = arith.constant 0 : index
    %c0_4 = arith.constant 0 : index
    %3 = vector.load %arg3[%c0_3, %c0_4] : memref<1x6xf32, #tpu.memory_space<vmem>>, vector<1x6xf32>
    %4 = vector.broadcast %3 : vector<1x6xf32> to vector<1152x6xf32>
    %5 = arith.addf %2, %4 : vector<1152x6xf32>
    %cst_5 = arith.constant 0.000000e+00 : f32
    %6 = vector.broadcast %cst_5 : f32 to vector<1152x6xf32>
    %7 = arith.maximumf %5, %6 : vector<1152x6xf32>
    %8 = vector.extract_strided_slice %7 {offsets = [0, 0], sizes = [288, 6], strides = [1, 1]} : vector<1152x6xf32> to vector<288x6xf32>
    %9 = vector.extract_strided_slice %7 {offsets = [288, 0], sizes = [288, 6], strides = [1, 1]} : vector<1152x6xf32> to vector<288x6xf32>
    %10 = arith.maximumf %8, %9 : vector<288x6xf32>
    %11 = vector.extract_strided_slice %7 {offsets = [576, 0], sizes = [288, 6], strides = [1, 1]} : vector<1152x6xf32> to vector<288x6xf32>
    %12 = vector.extract_strided_slice %7 {offsets = [864, 0], sizes = [288, 6], strides = [1, 1]} : vector<1152x6xf32> to vector<288x6xf32>
    %13 = arith.maximumf %11, %12 : vector<288x6xf32>
    %14 = arith.maximumf %10, %13 : vector<288x6xf32>
    %15 = arith.truncf %14 : vector<288x6xf32> to vector<288x6xbf16>
    %c0_6 = arith.constant 0 : index
    %c0_7 = arith.constant 0 : index
    %16 = vector.load %arg4[%c0_6, %c0_7] : memref<288x6xbf16, #tpu.memory_space<vmem>>, vector<288x6xbf16>
    tpu.vector_store %arg4[%c0_6, %c0_7], %15 {strides = array<i32>} : memref<288x6xbf16, #tpu.memory_space<vmem>>, vector<288x6xbf16>,
    return
  }
  func.func @transform_0(%arg0: i32) -> (i32, i32) {
    %c0_i32 = arith.constant 0 : i32
    %c0_i32_0 = arith.constant 0 : i32
    %c0_i32_1 = arith.constant 0 : i32
    return %c0_i32, %c0_i32_0 : i32, i32
  }
  func.func @transform_1(%arg0: i32) -> (i32, i32) {
    %c0_i32 = arith.constant 0 : i32
    %c0_i32_0 = arith.constant 0 : i32
    %c0_i32_1 = arith.constant 0 : i32
    return %c0_i32, %c0_i32_0 : i32, i32
  }
  func.func @transform_2(%arg0: i32) -> (i32, i32) {
    %c0_i32 = arith.constant 0 : i32
    %c0_i32_0 = arith.constant 0 : i32
    %c0_i32_1 = arith.constant 0 : i32
    return %c0_i32, %c0_i32_0 : i32, i32
  }
  func.func @transform_3(%arg0: i32) -> (i32, i32) {
    %c0_i32 = arith.constant 0 : i32
    %c0_i32_0 = arith.constant 0 : i32
    %c0_i32_1 = arith.constant 0 : i32
    return %c0_i32, %c0_i32_0 : i32, i32
  }
}

module attributes {stable_mosaic.version = 11 : i64} {
  func.func @_conv_relu_pool_kernel(%arg0: i32, %arg1: memref<128x150xbf16, #tpu.memory_space<vmem>>, %arg2: memref<150x16xbf16, #tpu.memory_space<vmem>>, %arg3: memref<1x16xf32, #tpu.memory_space<vmem>>, %arg4: memref<32x16xf32, #tpu.memory_space<vmem>>) attributes {dimension_semantics = [#tpu.dimension_semantics<arbitrary>], iteration_bounds = array<i64: 1>, scalar_prefetch = 0 : i64, scratch_operands = 0 : i64, tpu.core_type = #tpu.core_type<tc>, window_params = [{pipeline_mode = #tpu.pipeline_mode<synchronous>, transform_indices = @transform_0, window_bounds = array<i64: 128, 150>}, {pipeline_mode = #tpu.pipeline_mode<synchronous>, transform_indices = @transform_1, window_bounds = array<i64: 150, 16>}, {pipeline_mode = #tpu.pipeline_mode<synchronous>, transform_indices = @transform_2, window_bounds = array<i64: 1, 16>}, {pipeline_mode = #tpu.pipeline_mode<synchronous>, transform_indices = @transform_3, window_bounds = array<i64: 32, 16>}]} {
    %c0 = arith.constant 0 : index
    %c0_0 = arith.constant 0 : index
    %0 = vector.load %arg1[%c0, %c0_0] : memref<128x150xbf16, #tpu.memory_space<vmem>>, vector<128x150xbf16>
    %c0_1 = arith.constant 0 : index
    %c0_2 = arith.constant 0 : index
    %1 = vector.load %arg2[%c0_1, %c0_2] : memref<150x16xbf16, #tpu.memory_space<vmem>>, vector<150x16xbf16>
    %cst = arith.constant dense<0.000000e+00> : vector<128x16xf32>
    %2 = tpu.matmul %0, %1, %cst {dimension_numbers = #tpu.dot_dimension_numbers<[1], [0], [0], [1], [0, 0, 1, 1], [], []>} : vector<128x150xbf16>, vector<150x16xbf16>, vector<128x16xf32> -> vector<128x16xf32>
    %c0_3 = arith.constant 0 : index
    %c0_4 = arith.constant 0 : index
    %3 = vector.load %arg3[%c0_3, %c0_4] : memref<1x16xf32, #tpu.memory_space<vmem>>, vector<1x16xf32>
    %4 = vector.broadcast %3 : vector<1x16xf32> to vector<128x16xf32>
    %5 = arith.addf %2, %4 : vector<128x16xf32>
    %cst_5 = arith.constant 0.000000e+00 : f32
    %6 = vector.broadcast %cst_5 : f32 to vector<128x16xf32>
    %7 = arith.maximumf %5, %6 : vector<128x16xf32>
    %8 = vector.extract_strided_slice %7 {offsets = [0, 0], sizes = [32, 16], strides = [1, 1]} : vector<128x16xf32> to vector<32x16xf32>
    %9 = vector.extract_strided_slice %7 {offsets = [32, 0], sizes = [32, 16], strides = [1, 1]} : vector<128x16xf32> to vector<32x16xf32>
    %10 = arith.maximumf %8, %9 : vector<32x16xf32>
    %11 = vector.extract_strided_slice %7 {offsets = [64, 0], sizes = [32, 16], strides = [1, 1]} : vector<128x16xf32> to vector<32x16xf32>
    %12 = vector.extract_strided_slice %7 {offsets = [96, 0], sizes = [32, 16], strides = [1, 1]} : vector<128x16xf32> to vector<32x16xf32>
    %13 = arith.maximumf %11, %12 : vector<32x16xf32>
    %14 = arith.maximumf %10, %13 : vector<32x16xf32>
    %c0_6 = arith.constant 0 : index
    %c0_7 = arith.constant 0 : index
    %15 = vector.load %arg4[%c0_6, %c0_7] : memref<32x16xf32, #tpu.memory_space<vmem>>, vector<32x16xf32>
    tpu.vector_store %arg4[%c0_6, %c0_7], %14 {strides = array<i32>} : memref<32x16xf32, #tpu.memory_space<vmem>>, vector<32x16xf32>,
    return
  }
  func.func @transform_0(%arg0: i32) -> (i32, i32) {
    %c0_i32 = arith.constant 0 : i32
    %c0_i32_0 = arith.constant 0 : i32
    %c0_i32_1 = arith.constant 0 : i32
    return %c0_i32, %c0_i32_0 : i32, i32
  }
  func.func @transform_1(%arg0: i32) -> (i32, i32) {
    %c0_i32 = arith.constant 0 : i32
    %c0_i32_0 = arith.constant 0 : i32
    %c0_i32_1 = arith.constant 0 : i32
    return %c0_i32, %c0_i32_0 : i32, i32
  }
  func.func @transform_2(%arg0: i32) -> (i32, i32) {
    %c0_i32 = arith.constant 0 : i32
    %c0_i32_0 = arith.constant 0 : i32
    %c0_i32_1 = arith.constant 0 : i32
    return %c0_i32, %c0_i32_0 : i32, i32
  }
  func.func @transform_3(%arg0: i32) -> (i32, i32) {
    %c0_i32 = arith.constant 0 : i32
    %c0_i32_0 = arith.constant 0 : i32
    %c0_i32_1 = arith.constant 0 : i32
    return %c0_i32, %c0_i32_0 : i32, i32
  }
}

module attributes {stable_mosaic.version = 11 : i64} {
  func.func @_fc_stack_kernel(%arg0: i32, %arg1: memref<2x256xf32, #tpu.memory_space<vmem>>, %arg2: memref<256x120xbf16, #tpu.memory_space<vmem>>, %arg3: memref<1x120xf32, #tpu.memory_space<vmem>>, %arg4: memref<120x84xbf16, #tpu.memory_space<vmem>>, %arg5: memref<1x84xf32, #tpu.memory_space<vmem>>, %arg6: memref<84x10xbf16, #tpu.memory_space<vmem>>, %arg7: memref<1x10xf32, #tpu.memory_space<vmem>>, %arg8: memref<2x10xf32, #tpu.memory_space<vmem>>) attributes {dimension_semantics = [#tpu.dimension_semantics<arbitrary>], iteration_bounds = array<i64: 1>, scalar_prefetch = 0 : i64, scratch_operands = 0 : i64, tpu.core_type = #tpu.core_type<tc>, window_params = [{pipeline_mode = #tpu.pipeline_mode<synchronous>, transform_indices = @transform_0, window_bounds = array<i64: 2, 256>}, {pipeline_mode = #tpu.pipeline_mode<synchronous>, transform_indices = @transform_1, window_bounds = array<i64: 256, 120>}, {pipeline_mode = #tpu.pipeline_mode<synchronous>, transform_indices = @transform_2, window_bounds = array<i64: 1, 120>}, {pipeline_mode = #tpu.pipeline_mode<synchronous>, transform_indices = @transform_3, window_bounds = array<i64: 120, 84>}, {pipeline_mode = #tpu.pipeline_mode<synchronous>, transform_indices = @transform_4, window_bounds = array<i64: 1, 84>}, {pipeline_mode = #tpu.pipeline_mode<synchronous>, transform_indices = @transform_5, window_bounds = array<i64: 84, 10>}, {pipeline_mode = #tpu.pipeline_mode<synchronous>, transform_indices = @transform_6, window_bounds = array<i64: 1, 10>}, {pipeline_mode = #tpu.pipeline_mode<synchronous>, transform_indices = @transform_7, window_bounds = array<i64: 2, 10>}]} {
    %c0 = arith.constant 0 : index
    %c0_0 = arith.constant 0 : index
    %0 = vector.load %arg1[%c0, %c0_0] : memref<2x256xf32, #tpu.memory_space<vmem>>, vector<2x256xf32>
    %1 = arith.truncf %0 : vector<2x256xf32> to vector<2x256xbf16>
    %c0_1 = arith.constant 0 : index
    %c0_2 = arith.constant 0 : index
    %2 = vector.load %arg2[%c0_1, %c0_2] : memref<256x120xbf16, #tpu.memory_space<vmem>>, vector<256x120xbf16>
    %cst = arith.constant dense<0.000000e+00> : vector<2x120xf32>
    %3 = tpu.matmul %1, %2, %cst {dimension_numbers = #tpu.dot_dimension_numbers<[1], [0], [0], [1], [0, 0, 1, 1], [], []>} : vector<2x256xbf16>, vector<256x120xbf16>, vector<2x120xf32> -> vector<2x120xf32>
    %c0_3 = arith.constant 0 : index
    %c0_4 = arith.constant 0 : index
    %4 = vector.load %arg3[%c0_3, %c0_4] : memref<1x120xf32, #tpu.memory_space<vmem>>, vector<1x120xf32>
    %5 = vector.broadcast %4 : vector<1x120xf32> to vector<2x120xf32>
    %6 = arith.addf %3, %5 : vector<2x120xf32>
    %cst_5 = arith.constant 0.000000e+00 : f32
    %7 = vector.broadcast %cst_5 : f32 to vector<2x120xf32>
    %8 = arith.maximumf %6, %7 : vector<2x120xf32>
    %9 = arith.truncf %8 : vector<2x120xf32> to vector<2x120xbf16>
    %c0_6 = arith.constant 0 : index
    %c0_7 = arith.constant 0 : index
    %10 = vector.load %arg4[%c0_6, %c0_7] : memref<120x84xbf16, #tpu.memory_space<vmem>>, vector<120x84xbf16>
    %cst_8 = arith.constant dense<0.000000e+00> : vector<2x84xf32>
    %11 = tpu.matmul %9, %10, %cst_8 {dimension_numbers = #tpu.dot_dimension_numbers<[1], [0], [0], [1], [0, 0, 1, 1], [], []>} : vector<2x120xbf16>, vector<120x84xbf16>, vector<2x84xf32> -> vector<2x84xf32>
    %c0_9 = arith.constant 0 : index
    %c0_10 = arith.constant 0 : index
    %12 = vector.load %arg5[%c0_9, %c0_10] : memref<1x84xf32, #tpu.memory_space<vmem>>, vector<1x84xf32>
    %13 = vector.broadcast %12 : vector<1x84xf32> to vector<2x84xf32>
    %14 = arith.addf %11, %13 : vector<2x84xf32>
    %cst_11 = arith.constant 0.000000e+00 : f32
    %15 = vector.broadcast %cst_11 : f32 to vector<2x84xf32>
    %16 = arith.maximumf %14, %15 : vector<2x84xf32>
    %17 = arith.truncf %16 : vector<2x84xf32> to vector<2x84xbf16>
    %c0_12 = arith.constant 0 : index
    %c0_13 = arith.constant 0 : index
    %18 = vector.load %arg6[%c0_12, %c0_13] : memref<84x10xbf16, #tpu.memory_space<vmem>>, vector<84x10xbf16>
    %cst_14 = arith.constant dense<0.000000e+00> : vector<2x10xf32>
    %19 = tpu.matmul %17, %18, %cst_14 {dimension_numbers = #tpu.dot_dimension_numbers<[1], [0], [0], [1], [0, 0, 1, 1], [], []>} : vector<2x84xbf16>, vector<84x10xbf16>, vector<2x10xf32> -> vector<2x10xf32>
    %c0_15 = arith.constant 0 : index
    %c0_16 = arith.constant 0 : index
    %20 = vector.load %arg7[%c0_15, %c0_16] : memref<1x10xf32, #tpu.memory_space<vmem>>, vector<1x10xf32>
    %21 = vector.broadcast %20 : vector<1x10xf32> to vector<2x10xf32>
    %22 = arith.addf %19, %21 : vector<2x10xf32>
    %c0_17 = arith.constant 0 : index
    %c0_18 = arith.constant 0 : index
    %23 = vector.load %arg8[%c0_17, %c0_18] : memref<2x10xf32, #tpu.memory_space<vmem>>, vector<2x10xf32>
    tpu.vector_store %arg8[%c0_17, %c0_18], %22 {strides = array<i32>} : memref<2x10xf32, #tpu.memory_space<vmem>>, vector<2x10xf32>,
    return
  }
  func.func @transform_0(%arg0: i32) -> (i32, i32) {
    %c0_i32 = arith.constant 0 : i32
    %c0_i32_0 = arith.constant 0 : i32
    %c0_i32_1 = arith.constant 0 : i32
    return %c0_i32, %c0_i32_0 : i32, i32
  }
  func.func @transform_1(%arg0: i32) -> (i32, i32) {
    %c0_i32 = arith.constant 0 : i32
    %c0_i32_0 = arith.constant 0 : i32
    %c0_i32_1 = arith.constant 0 : i32
    return %c0_i32, %c0_i32_0 : i32, i32
  }
  func.func @transform_2(%arg0: i32) -> (i32, i32) {
    %c0_i32 = arith.constant 0 : i32
    %c0_i32_0 = arith.constant 0 : i32
    %c0_i32_1 = arith.constant 0 : i32
    return %c0_i32, %c0_i32_0 : i32, i32
  }
  func.func @transform_3(%arg0: i32) -> (i32, i32) {
    %c0_i32 = arith.constant 0 : i32
    %c0_i32_0 = arith.constant 0 : i32
    %c0_i32_1 = arith.constant 0 : i32
    return %c0_i32, %c0_i32_0 : i32, i32
  }
  func.func @transform_4(%arg0: i32) -> (i32, i32) {
    %c0_i32 = arith.constant 0 : i32
    %c0_i32_0 = arith.constant 0 : i32
    %c0_i32_1 = arith.constant 0 : i32
    return %c0_i32, %c0_i32_0 : i32, i32
  }
  func.func @transform_5(%arg0: i32) -> (i32, i32) {
    %c0_i32 = arith.constant 0 : i32
    %c0_i32_0 = arith.constant 0 : i32
    %c0_i32_1 = arith.constant 0 : i32
    return %c0_i32, %c0_i32_0 : i32, i32
  }
  func.func @transform_6(%arg0: i32) -> (i32, i32) {
    %c0_i32 = arith.constant 0 : i32
    %c0_i32_0 = arith.constant 0 : i32
    %c0_i32_1 = arith.constant 0 : i32
    return %c0_i32, %c0_i32_0 : i32, i32
  }
  func.func @transform_7(%arg0: i32) -> (i32, i32) {
    %c0_i32 = arith.constant 0 : i32
    %c0_i32_0 = arith.constant 0 : i32
    %c0_i32_1 = arith.constant 0 : i32
    return %c0_i32, %c0_i32_0 : i32, i32
  }
}

</mosaic_0001>

<bundles_post_ra>
// kernel: lenet_forward.3
= control target key start
LH: loop header
LB: loop body
LE: loop exit
PB: predicated region body
PF: predicated region fallthrough
CT: control target
= control target key end

     0   :  { %vm758_vm0 = vcmask 1043456   ;;  %vm759_vm1 = vcmask 1044480   ;;  %vm541_vm2 = vcmask 203776   ;;  %v2332_v1 = vmov 65535   ;;  %s3419_s1 = inlined_call_operand.vmem [shape: bf16[25,6], index: 1, kind: input, shape index: {}]   ;;  %s3420_s0 = inlined_call_operand.vmem [shape: bf16[1152,25], index: 0, kind: input, shape index: {}]   ;;  %s3421_s2 = inlined_call_operand.vmem [shape: f32[1,6], index: 2, kind: input, shape index: {}]   ;;  %s3422_s3 = inlined_call_operand.vmem [shape: bf16[288,6], index: 3, kind: output, shape index: {}]  }
   0x1   :  { %v2257_v0 = vld [vmem:[%s3419_s1] sm:$0xff]   ;;  %v760_v2 = vsel %vm758_vm0, 4294967295, %v2332_v1  ;;  %v2258_v3 = vld [vmem:[%s3419_s1 + $0x8] sm:$0x1f]   ;;  %v2263_v10 = vld [vmem:[%s3420_s0 + $0x10] sm:$0xff]   ;;  %vm1770_vm3 = vcmask 44032  }
   0x2   :  { %2104 = vmatprep.subr.bf16.mxu0 %v2257_v0  ;;  %2252 = vmatprep.subr.bf16.mxu1 %v2257_v0  ;;  %v761_v4 = vsel %vm759_vm1, %v760_v2, 0  ;;  %v2259_v5 = vld [vmem:[%s3420_s0] sm:$0xff]   ;;  %v2261_v8 = vld [vmem:[%s3420_s0 + $0x8] sm:$0xff]   ;;  %v2264_v11 = vld [vmem:[%s3420_s0 + $0x130] sm:$0xff]  }
   0x3   :  { %2105 = vmatpush3.bf16.msra.mxu0 %v2257_v0  ;;  %2254 = vmatpush3.bf16.msra.mxu1 %v2257_v0  ;;  %v763_v6 = vand.u32 %v2258_v3, %v761_v4  ;;  %v2260_v7 = vld [vmem:[%s3420_s0 + $0x120] sm:$0xff]   ;;  %v2262_v9 = vld [vmem:[%s3420_s0 + $0x128] sm:$0xff]   ;;  %v2265_v12 = vld [vmem:[%s3420_s0 + $0x18] sm:$0xff]  }
   0x4   :  { %2108 = vmatprep.mubr.msk.bf16.mxu0 %vm541_vm2, %v2259_v5  ;;  %2180 = vmatprep.mubr.msk.bf16.mxu1 %vm541_vm2, %v2260_v7  ;;  %v2266_v13 = vld [vmem:[%s3420_s0 + $0x138] sm:$0xff]   ;;  %v2267_v14 = vld [vmem:[%s3420_s0 + $0x20] sm:$0xff]   ;;  %v2269_v16 = vld [vmem:[%s3420_s0 + $0x28] sm:$0xff]  }
   0x5   :  { %2106 = vmatprep.subr.bf16.mxu0 %v763_v6  ;;  %2253 = vmatprep.subr.bf16.mxu1 %v763_v6  ;;  %v2268_v15 = vld [vmem:[%s3420_s0 + $0x140] sm:$0xff]   ;;  %v2270_v17 = vld [vmem:[%s3420_s0 + $0x148] sm:$0xff]   ;;  %v2271_v18 = vld [vmem:[%s3420_s0 + $0x30] sm:$0xff]  }
   0x6   :  { %v2272_v19 = vld [vmem:[%s3420_s0 + $0x150] sm:$0xff]   ;;  %v2273_v20 = vld [vmem:[%s3420_s0 + $0x38] sm:$0xff]   ;;  %v2275_v22 = vld [vmem:[%s3420_s0 + $0x40] sm:$0xff]  }
   0x7   :  { %2107 = vmatpush3.bf16.msra.mxu0 %v763_v6  ;;  %2255 = vmatpush3.bf16.msra.mxu1 %v763_v6  ;;  %v2274_v21 = vld [vmem:[%s3420_s0 + $0x158] sm:$0xff]   ;;  %v2276_v23 = vld [vmem:[%s3420_s0 + $0x160] sm:$0xff]   ;;  %v2277_v24 = vld [vmem:[%s3420_s0 + $0x48] sm:$0xff]  }
   0x8   :  { %v2278_v25 = vld [vmem:[%s3420_s0 + $0x168] sm:$0xff]   ;;  %v2279_v26 = vld [vmem:[%s3420_s0 + $0x50] sm:$0xff]   ;;  %v2281_v28 = vld [vmem:[%s3420_s0 + $0x58] sm:$0xff]  }
   0x9   :  { %v2280_v27 = vld [vmem:[%s3420_s0 + $0x170] sm:$0xff]   ;;  %v2282_v29 = vld [vmem:[%s3420_s0 + $0x178] sm:$0xff]   ;;  %v2283_v30 = vld [vmem:[%s3420_s0 + $0x60] sm:$0xff]  }
   0xa   :  { %2109 = vmatmul.mubr.msk.bf16.vlgmr.msra.gmra.mrb[0].mxu0 %vm541_vm2, %v2261_v8  ;;  %2181 = vmatmul.mubr.msk.bf16.vlgmr.msra.gmra.mrb[0].mxu1 %vm541_vm2, %v2262_v9  ;;  %v2284_v31 = vld [vmem:[%s3420_s0 + $0x180] sm:$0xff]   ;;  %v2285_v32 = vld [vmem:[%s3420_s0 + $0x68] sm:$0xff]   ;;  %v2287_v34 = vld [vmem:[%s3420_s0 + $0x70] sm:$0xff]  }
   0xb   :  { %2112 = vmatprep.mubr.msk.bf16.mxu0 %vm541_vm2, %v2263_v10  ;;  %2184 = vmatprep.mubr.msk.bf16.mxu1 %vm541_vm2, %v2264_v11  ;;  %v2286_v33 = vld [vmem:[%s3420_s0 + $0x188] sm:$0xff]   ;;  %v2288_v35 = vld [vmem:[%s3420_s0 + $0x190] sm:$0xff]   ;;  %v2289_v36 = vld [vmem:[%s3420_s0 + $0x78] sm:$0xff]  }
   0xc   :  { %v2290_v37 = vld [vmem:[%s3420_s0 + $0x198] sm:$0xff]   ;;  %v2291_v38 = vld [vmem:[%s3420_s0 + $0x80] sm:$0xff]   ;;  %v2293_v40 = vld [vmem:[%s3420_s0 + $0x88] sm:$0xff]  }
   0xd   :  { %v2292_v39 = vld [vmem:[%s3420_s0 + $0x1a0] sm:$0xff]   ;;  %v2294_v41 = vld [vmem:[%s3420_s0 + $0x1a8] sm:$0xff]   ;;  %v2295_v42 = vld [vmem:[%s3420_s0 + $0x90] sm:$0xff]  }
   0xe   :  { %v2296_v43 = vld [vmem:[%s3420_s0 + $0x1b0] sm:$0xff]   ;;  %v2297_v44 = vld [vmem:[%s3420_s0 + $0x98] sm:$0xff]   ;;  %v2299_v46 = vld [vmem:[%s3420_s0 + $0xa0] sm:$0xff]  }
   0xf   :  { %v2298_v45 = vld [vmem:[%s3420_s0 + $0x1b8] sm:$0xff]   ;;  %v2300_v47 = vld [vmem:[%s3420_s0 + $0x1c0] sm:$0xff]   ;;  %v2301_v48 = vld [vmem:[%s3420_s0 + $0xa8] sm:$0xff]  }
  0x10   :  { %v2302_v49 = vld [vmem:[%s3420_s0 + $0x1c8] sm:$0xff]   ;;  %v2303_v50 = vld [vmem:[%s3420_s0 + $0xb0] sm:$0xff]   ;;  %v2305_v52 = vld [vmem:[%s3420_s0 + $0xb8] sm:$0xff]  }
  0x11   :  { %v2304_v51 = vld [vmem:[%s3420_s0 + $0x1d0] sm:$0xff]   ;;  %v2306_v53 = vld [vmem:[%s3420_s0 + $0x1d8] sm:$0xff]   ;;  %v2307_v54 = vld [vmem:[%s3420_s0 + $0xc0] sm:$0xff]  }
  0x12   :  { %2113 = vmatmul.mubr.msk.bf16.gmra.mrb[4].mxu0 %vm541_vm2, %v2265_v12  ;;  %2185 = vmatmul.mubr.msk.bf16.gmra.mrb[4].mxu1 %vm541_vm2, %v2266_v13  ;;  %v2308_v55 = vld [vmem:[%s3420_s0 + $0x1e0] sm:$0xff]   ;;  %v2309_v56 = vld [vmem:[%s3420_s0 + $0xc8] sm:$0xff]   ;;  %v2311_v58 = vld [vmem:[%s3420_s0 + $0xd0] sm:$0xff]  }
  0x13   :  { %2116 = vmatprep.mubr.msk.bf16.mxu0 %vm541_vm2, %v2267_v14  ;;  %2188 = vmatprep.mubr.msk.bf16.mxu1 %vm541_vm2, %v2268_v15  ;;  %v2310_v57 = vld [vmem:[%s3420_s0 + $0x1e8] sm:$0xff]   ;;  %v2312_v59 = vld [vmem:[%s3420_s0 + $0x1f0] sm:$0xff]   ;;  %v2313_v60 = vld [vmem:[%s3420_s0 + $0xd8] sm:$0xff]  }
  0x14   :  { %v2314_v61 = vld [vmem:[%s3420_s0 + $0x1f8] sm:$0xff]   ;;  %v2315_v62 = vld [vmem:[%s3420_s0 + $0xe0] sm:$0xff]   ;;  %v2317_v0 = vld [vmem:[%s3420_s0 + $0xe8] sm:$0xff]  }
  0x15   :  { %v2316_v63 = vld [vmem:[%s3420_s0 + $0x200] sm:$0xff]   ;;  %v2318_v1 = vld [vmem:[%s3420_s0 + $0x208] sm:$0xff]   ;;  %v2319_v2 = vld [vmem:[%s3420_s0 + $0xf0] sm:$0xff]  }
  0x16   :  { %v2320_v3 = vld [vmem:[%s3420_s0 + $0x210] sm:$0xff]   ;;  %v2321_v4 = vld [vmem:[%s3420_s0 + $0xf8] sm:$0xff]   ;;  %v2323_v6 = vld [vmem:[%s3420_s0 + $0x100] sm:$0xff]  }
  0x17   :  { %v2322_v5 = vld [vmem:[%s3420_s0 + $0x218] sm:$0xff]   ;;  %v2324_v7 = vld [vmem:[%s3420_s0 + $0x220] sm:$0xff]   ;;  %v2325_v8 = vld [vmem:[%s3420_s0 + $0x108] sm:$0xff]  }
  0x18   :  { %v2326_v9 = vld [vmem:[%s3420_s0 + $0x228] sm:$0xff]   ;;  %v2327_v10 = vld [vmem:[%s3420_s0 + $0x110] sm:$0xff]   ;;  %v2329_v12 = vld [vmem:[%s3420_s0 + $0x118] sm:$0xff]  }
  0x19   :  { %v2328_v11 = vld [vmem:[%s3420_s0 + $0x230] sm:$0xff]   ;;  %v2330_v13 = vld [vmem:[%s3420_s0 + $0x238] sm:$0xff]  }
  0x1a   :  { %2117 = vmatmul.mubr.msk.bf16.gmra.mrb[8].mxu0 %vm541_vm2, %v2269_v16  ;;  %2189 = vmatmul.mubr.msk.bf16.gmra.mrb[8].mxu1 %vm541_vm2, %v2270_v17 }
  0x1b   :  { %2120 = vmatprep.mubr.msk.bf16.mxu0 %vm541_vm2, %v2271_v18  ;;  %2192 = vmatprep.mubr.msk.bf16.mxu1 %vm541_vm2, %v2272_v19 }
  0x22   :  { %2121 = vmatmul.mubr.msk.bf16.gmra.mrb[12].mxu0 %vm541_vm2, %v2273_v20  ;;  %2193 = vmatmul.mubr.msk.bf16.gmra.mrb[12].mxu1 %vm541_vm2, %v2274_v21 }
  0x23   :  { %2124 = vmatprep.mubr.msk.bf16.mxu0 %vm541_vm2, %v2275_v22  ;;  %2196 = vmatprep.mubr.msk.bf16.mxu1 %vm541_vm2, %v2276_v23 }
  0x2a   :  { %2125 = vmatmul.mubr.msk.bf16.gmra.mrb[16].mxu0 %vm541_vm2, %v2277_v24  ;;  %2197 = vmatmul.mubr.msk.bf16.gmra.mrb[16].mxu1 %vm541_vm2, %v2278_v25 }
  0x2b   :  { %2128 = vmatprep.mubr.msk.bf16.mxu0 %vm541_vm2, %v2279_v26  ;;  %2200 = vmatprep.mubr.msk.bf16.mxu1 %vm541_vm2, %v2280_v27 }
  0x32   :  { %2129 = vmatmul.mubr.msk.bf16.gmra.mrb[20].mxu0 %vm541_vm2, %v2281_v28  ;;  %2201 = vmatmul.mubr.msk.bf16.gmra.mrb[20].mxu1 %vm541_vm2, %v2282_v29 }
  0x33   :  { %2132 = vmatprep.mubr.msk.bf16.mxu0 %vm541_vm2, %v2283_v30  ;;  %2204 = vmatprep.mubr.msk.bf16.mxu1 %vm541_vm2, %v2284_v31 }
  0x3a   :  { %2133 = vmatmul.mubr.msk.bf16.gmra.mrb[24].mxu0 %vm541_vm2, %v2285_v32  ;;  %2205 = vmatmul.mubr.msk.bf16.gmra.mrb[24].mxu1 %vm541_vm2, %v2286_v33 }
  0x3b   :  { %2136 = vmatprep.mubr.msk.bf16.mxu0 %vm541_vm2, %v2287_v34  ;;  %2208 = vmatprep.mubr.msk.bf16.mxu1 %vm541_vm2, %v2288_v35 }
  0x42   :  { %2137 = vmatmul.mubr.msk.bf16.gmra.mrb[28].mxu0 %vm541_vm2, %v2289_v36  ;;  %2209 = vmatmul.mubr.msk.bf16.gmra.mrb[28].mxu1 %vm541_vm2, %v2290_v37 }
  0x43   :  { %2140 = vmatprep.mubr.msk.bf16.mxu0 %vm541_vm2, %v2291_v38  ;;  %2212 = vmatprep.mubr.msk.bf16.mxu1 %vm541_vm2, %v2292_v39 }
  0x4a   :  { %2141 = vmatmul.mubr.msk.bf16.gmra.mrb[32].mxu0 %vm541_vm2, %v2293_v40  ;;  %2213 = vmatmul.mubr.msk.bf16.gmra.mrb[32].mxu1 %vm541_vm2, %v2294_v41 }
  0x4b   :  { %2144 = vmatprep.mubr.msk.bf16.mxu0 %vm541_vm2, %v2295_v42  ;;  %2216 = vmatprep.mubr.msk.bf16.mxu1 %vm541_vm2, %v2296_v43 }
  0x52   :  { %2145 = vmatmul.mubr.msk.bf16.gmra.mrb[36].mxu0 %vm541_vm2, %v2297_v44  ;;  %2217 = vmatmul.mubr.msk.bf16.gmra.mrb[36].mxu1 %vm541_vm2, %v2298_v45 }
  0x53   :  { %2148 = vmatprep.mubr.msk.bf16.mxu0 %vm541_vm2, %v2299_v46  ;;  %2220 = vmatprep.mubr.msk.bf16.mxu1 %vm541_vm2, %v2300_v47 }
  0x5a   :  { %2149 = vmatmul.mubr.msk.bf16.gmra.mrb[40].mxu0 %vm541_vm2, %v2301_v48  ;;  %2221 = vmatmul.mubr.msk.bf16.gmra.mrb[40].mxu1 %vm541_vm2, %v2302_v49 }
  0x5b   :  { %2152 = vmatprep.mubr.msk.bf16.mxu0 %vm541_vm2, %v2303_v50  ;;  %2224 = vmatprep.mubr.msk.bf16.mxu1 %vm541_vm2, %v2304_v51 }
  0x62   :  { %2153 = vmatmul.mubr.msk.bf16.gmra.mrb[44].mxu0 %vm541_vm2, %v2305_v52  ;;  %2225 = vmatmul.mubr.msk.bf16.gmra.mrb[44].mxu1 %vm541_vm2, %v2306_v53  ;;  %v2692_v52 = vld [vmem:[%s3421_s2] ss:$0 sm:$0xff] }
  0x63   :  { %2156 = vmatprep.mubr.msk.bf16.mxu0 %vm541_vm2, %v2307_v54  ;;  %2228 = vmatprep.mubr.msk.bf16.mxu1 %vm541_vm2, %v2308_v55 }
  0x6a   :  { %2157 = vmatmul.mubr.msk.bf16.gmra.mrb[48].mxu0 %vm541_vm2, %v2309_v56  ;;  %2229 = vmatmul.mubr.msk.bf16.gmra.mrb[48].mxu1 %vm541_vm2, %v2310_v57 }
  0x6b   :  { %2160 = vmatprep.mubr.msk.bf16.mxu0 %vm541_vm2, %v2311_v58  ;;  %2232 = vmatprep.mubr.msk.bf16.mxu1 %vm541_vm2, %v2312_v59 }
  0x72   :  { %2161 = vmatmul.mubr.msk.bf16.gmra.mrb[52].mxu0 %vm541_vm2, %v2313_v60  ;;  %2233 = vmatmul.mubr.msk.bf16.gmra.mrb[52].mxu1 %vm541_vm2, %v2314_v61 }
  0x73   :  { %2164 = vmatprep.mubr.msk.bf16.mxu0 %vm541_vm2, %v2315_v62  ;;  %2236 = vmatprep.mubr.msk.bf16.mxu1 %vm541_vm2, %v2316_v63 }
  0x7a   :  { %2165 = vmatmul.mubr.msk.bf16.gmra.mrb[56].mxu0 %vm541_vm2, %v2317_v0  ;;  %2237 = vmatmul.mubr.msk.bf16.gmra.mrb[56].mxu1 %vm541_vm2, %v2318_v1 }
  0x7b   :  { %2168 = vmatprep.mubr.msk.bf16.mxu0 %vm541_vm2, %v2319_v2  ;;  %2240 = vmatprep.mubr.msk.bf16.mxu1 %vm541_vm2, %v2320_v3 }
  0x82   :  { %2169 = vmatmul.mubr.msk.bf16.gmra.mrb[60].mxu0 %vm541_vm2, %v2321_v4  ;;  %2241 = vmatmul.mubr.msk.bf16.gmra.mrb[60].mxu1 %vm541_vm2, %v2322_v5 }
  0x83   :  { %2172 = vmatprep.mubr.msk.bf16.mxu0 %vm541_vm2, %v2323_v6  ;;  %2244 = vmatprep.mubr.msk.bf16.mxu1 %vm541_vm2, %v2324_v7 }
  0x8a   :  { %2173 = vmatmul.mubr.msk.bf16.gmra.mrb[64].mxu0 %vm541_vm2, %v2325_v8  ;;  %2245 = vmatmul.mubr.msk.bf16.gmra.mrb[64].mxu1 %vm541_vm2, %v2326_v9 }
  0x8b   :  { %2176 = vmatprep.mubr.msk.bf16.mxu0 %vm541_vm2, %v2327_v10  ;;  %2248 = vmatprep.mubr.msk.bf16.mxu1 %vm541_vm2, %v2328_v11 }
  0x92   :  { %2177 = vmatmul.mubr.msk.bf16.gmra.mrb[68].mxu0 %vm541_vm2, %v2329_v12  ;;  %2249 = vmatmul.mubr.msk.bf16.gmra.mrb[68].mxu1 %vm541_vm2, %v2330_v13 }
  0xdd   :  { %v2110_v14 = vpop.f32.mrb[0].mxu0  ;;  %v2182_v15 = vpop.f32.mrb[0].mxu1 }
  0xde   :  { %v799_v16 = vpop.f32.mrb[1].mxu0  ;;  %v1087_v17 = vpop.f32.mrb[1].mxu1  ;;  %v2699_v55 = vadd.f32 %v2110_v14, %v2692_v52  ;;  %v2706_v58 = vadd.f32 %v2182_v15, %v2692_v52 }
  0xdf   :  { %v2111_v18 = vpop.f32.mrb[2].mxu0  ;;  %v2183_v19 = vpop.f32.mrb[2].mxu1  ;;  %v2709_v59 = vadd.f32 %v2692_v52, %v799_v16  ;;  %v2712_v60 = vadd.f32 %v2692_v52, %v1087_v17 }
  0xe0   :  { %v802_v20 = vpop.f32.mrb[3].mxu0  ;;  %v1090_v21 = vpop.f32.mrb[3].mxu1  ;;  %v2715_v61 = vadd.f32 %v2111_v18, %v2692_v52  ;;  %v2723_v1 = vadd.f32 %v2183_v19, %v2692_v52 }
  0xe1   :  { %v2726_v2 = vadd.f32 %v2692_v52, %v802_v20  ;;  %v2729_v3 = vadd.f32 %v2692_v52, %v1090_v21 }
  0xe5   :  { %v2114_v22 = vpop.f32.mrb[4].mxu0  ;;  %v2186_v23 = vpop.f32.mrb[4].mxu1 }
  0xe6   :  { %v815_v24 = vpop.f32.mrb[5].mxu0  ;;  %v1103_v25 = vpop.f32.mrb[5].mxu1  ;;  %v2736_v6 = vadd.f32 %v2114_v22, %v2692_v52  ;;  %v2739_v7 = vadd.f32 %v2186_v23, %v2692_v52 }
  0xe7   :  { %v2115_v26 = vpop.f32.mrb[6].mxu0  ;;  %v2187_v27 = vpop.f32.mrb[6].mxu1  ;;  %v2742_v8 = vadd.f32 %v2692_v52, %v815_v24  ;;  %v2745_v9 = vadd.f32 %v2692_v52, %v1103_v25 }
  0xe8   :  { %v818_v28 = vpop.f32.mrb[7].mxu0  ;;  %v1106_v29 = vpop.f32.mrb[7].mxu1  ;;  %v2752_v12 = vadd.f32 %v2115_v26, %v2692_v52  ;;  %v2755_v13 = vadd.f32 %v2187_v27, %v2692_v52 }
  0xe9   :  { %v2758_v14 = vadd.f32 %v2692_v52, %v818_v28  ;;  %v2761_v15 = vadd.f32 %v2692_v52, %v1106_v29 }
  0xeb   :  { %3455 = vst [vmem:[#allocation2_spill] sm:$0xff] %v2761_v15 }
  0xed   :  { %v2118_v30 = vpop.f32.mrb[8].mxu0  ;;  %v2647_v31 = vpop.f32.mrb[8].mxu1 }
  0xee   :  { %v2649_v32 = vpop.f32.mrb[9].mxu0  ;;  %v2651_v33 = vpop.f32.mrb[9].mxu1  ;;  %v2771_v23 = vadd.f32 %v2118_v30, %v2692_v52  ;;  %v2787_v24 = vadd.f32 %v2647_v31, %v2692_v52 }
  0xef   :  { %v2653_v34 = vpop.f32.mrb[10].mxu0  ;;  %v2655_v35 = vpop.f32.mrb[10].mxu1  ;;  %v2791_v26 = vadd.f32 %v2692_v52, %v2649_v32  ;;  %v2795_v28 = vadd.f32 %v2692_v52, %v2651_v33 }
  0xf0   :  { %v2657_v36 = vpop.f32.mrb[11].mxu0  ;;  %v2659_v37 = vpop.f32.mrb[11].mxu1  ;;  %3456 = vst [vmem:[#allocation3_spill] sm:$0xff] %v2771_v23  ;;  %v2799_v20 = vadd.f32 %v2653_v34, %v2692_v52  ;;  %v2808_v31 = vadd.f32 %v2655_v35, %v2692_v52 }
  0xf1   :  { %v2812_v32 = vadd.f32 %v2692_v52, %v2657_v36  ;;  %v2816_v33 = vadd.f32 %v2692_v52, %v2659_v37 }
  0xf3   :  { %3457 = vst [vmem:[#allocation4_spill] sm:$0xff] %v2812_v32  ;;  %3458 = vst [vmem:[#allocation5_spill] sm:$0xff] %v2816_v33 }
  0xf5   :  { %v2661_v38 = vpop.f32.mrb[12].mxu0  ;;  %v2663_v39 = vpop.f32.mrb[12].mxu1 }
  0xf6   :  { %v2665_v40 = vpop.f32.mrb[13].mxu0  ;;  %v2667_v41 = vpop.f32.mrb[13].mxu1  ;;  %v2824_v19 = vadd.f32 %v2661_v38, %v2692_v52  ;;  %v2828_v35 = vadd.f32 %v2663_v39, %v2692_v52 }
  0xf7   :  { %v2669_v42 = vpop.f32.mrb[14].mxu0  ;;  %v2671_v43 = vpop.f32.mrb[14].mxu1  ;;  %v2832_v36 = vadd.f32 %v2692_v52, %v2665_v40  ;;  %v2836_v37 = vadd.f32 %v2692_v52, %v2667_v41 }
  0xf8   :  { %v2673_v44 = vpop.f32.mrb[15].mxu0  ;;  %v2675_v45 = vpop.f32.mrb[15].mxu1  ;;  %v2844_v38 = vadd.f32 %v2669_v42, %v2692_v52  ;;  %v2848_v39 = vadd.f32 %v2671_v43, %v2692_v52 }
  0xf9   :  { %3459 = vst [vmem:[#allocation6_spill] sm:$0xff] %v2836_v37  ;;  %v2852_v40 = vadd.f32 %v2692_v52, %v2673_v44  ;;  %v2856_v41 = vadd.f32 %v2692_v52, %v2675_v45 }
  0xfa   :  { %3460 = vst [vmem:[#allocation7_spill] sm:$0xff] %v2844_v38  ;;  %3461 = vst [vmem:[#allocation8_spill] sm:$0xff] %v2848_v39 }
  0xfb   :  { %3462 = vst [vmem:[#allocation9_spill] sm:$0xff] %v2852_v40  ;;  %3463 = vst [vmem:[#allocation10_spill] sm:$0xff] %v2856_v41 }
  0xfd   :  { %v2677_v46 = vpop.f32.mrb[16].mxu0  ;;  %v2679_v47 = vpop.f32.mrb[16].mxu1 }
  0xfe   :  { %v2681_v48 = vpop.f32.mrb[17].mxu0  ;;  %v2683_v49 = vpop.f32.mrb[17].mxu1  ;;  %v2867_v44 = vadd.f32 %v2677_v46, %v2692_v52  ;;  %v2879_v46 = vadd.f32 %v2679_v47, %v2692_v52 }
  0xff   :  { %v2685_v50 = vpop.f32.mrb[18].mxu0  ;;  %v2687_v51 = vpop.f32.mrb[18].mxu1  ;;  %v2883_v17 = vadd.f32 %v2692_v52, %v2681_v48  ;;  %v2887_v0 = vadd.f32 %v2692_v52, %v2683_v49 }
 0x100   :  { %v2694_v53 = vpop.f32.mrb[19].mxu0  ;;  %v2696_v54 = vpop.f32.mrb[19].mxu1  ;;  %3464 = vst [vmem:[#allocation11_spill] sm:$0xff] %v2867_v44  ;;  %v2891_v23 = vadd.f32 %v2685_v50, %v2692_v52  ;;  %v2896_v47 = vadd.f32 %v2687_v51, %v2692_v52 }
 0x101   :  { %v2900_v48 = vadd.f32 %v2692_v52, %v2694_v53  ;;  %v2904_v49 = vadd.f32 %v2692_v52, %v2696_v54 }
 0x103   :  { %3465 = vst [vmem:[#allocation12_spill] sm:$0xff] %v2900_v48  ;;  %3466 = vst [vmem:[#allocation13_spill] sm:$0xff] %v2904_v49 }
 0x105   :  { %v2701_v56 = vpop.f32.mrb[20].mxu0  ;;  %v2703_v57 = vpop.f32.mrb[20].mxu1 }
 0x106   :  { %v2717_v62 = vpop.f32.mrb[21].mxu0  ;;  %v2719_v63 = vpop.f32.mrb[21].mxu1  ;;  %v2908_v50 = vadd.f32 %v2701_v56, %v2692_v52  ;;  %v2912_v42 = vadd.f32 %v2703_v57, %v2692_v52 }
 0x107   :  { %v2731_v4 = vpop.f32.mrb[22].mxu0  ;;  %v2733_v5 = vpop.f32.mrb[22].mxu1  ;;  %v2916_v51 = vadd.f32 %v2692_v52, %v2717_v62  ;;  %v2920_v53 = vadd.f32 %v2692_v52, %v2719_v63 }
 0x108   :  { %v2747_v10 = vpop.f32.mrb[23].mxu0  ;;  %v2749_v11 = vpop.f32.mrb[23].mxu1  ;;  %v2924_v41 = vadd.f32 %v2731_v4, %v2692_v52  ;;  %v2928_v56 = vadd.f32 %v2733_v5, %v2692_v52 }
 0x109   :  { %3467 = vst [vmem:[#allocation14_spill] sm:$0xff] %v2916_v51  ;;  %3468 = vst [vmem:[#allocation15_spill] sm:$0xff] %v2920_v53  ;;  %v2932_v57 = vadd.f32 %v2692_v52, %v2747_v10  ;;  %v2936_v62 = vadd.f32 %v2692_v52, %v2749_v11 }
 0x10a   :  { %3469 = vst [vmem:[#allocation16_spill] sm:$0xff] %v2924_v41  ;;  %3470 = vst [vmem:[#allocation17_spill] sm:$0xff] %v2928_v56 }
 0x10b   :  { %3471 = vst [vmem:[#allocation18_spill] sm:$0xff] %v2932_v57  ;;  %3472 = vst [vmem:[#allocation19_spill] sm:$0xff] %v2936_v62 }
 0x10d   :  { %v2781_v22 = vpop.f32.mrb[24].mxu0  ;;  %v2783_v30 = vpop.f32.mrb[24].mxu1 }
 0x10e   :  { %v2801_v21 = vpop.f32.mrb[25].mxu0  ;;  %v2803_v29 = vpop.f32.mrb[25].mxu1  ;;  %v2947_v10 = vadd.f32 %v2781_v22, %v2692_v52  ;;  %v2959_v22 = vadd.f32 %v2783_v30, %v2692_v52 }
 0x10f   :  { %v2818_v34 = vpop.f32.mrb[26].mxu0  ;;  %v2820_v25 = vpop.f32.mrb[26].mxu1  ;;  %v2963_v63 = vadd.f32 %v2692_v52, %v2801_v21  ;;  %v2967_v39 = vadd.f32 %v2692_v52, %v2803_v29 }
 0x110   :  { %v2838_v27 = vpop.f32.mrb[27].mxu0  ;;  %v2840_v18 = vpop.f32.mrb[27].mxu1  ;;  %3473 = vst [vmem:[#allocation20_spill] sm:$0xff] %v2947_v10  ;;  %v2971_v38 = vadd.f32 %v2818_v34, %v2692_v52  ;;  %v2976_v30 = vadd.f32 %v2820_v25, %v2692_v52 }
 0x111   :  { %v2980_v21 = vadd.f32 %v2692_v52, %v2838_v27  ;;  %v2984_v29 = vadd.f32 %v2692_v52, %v2840_v18 }
 0x112   :  { %3474 = vst [vmem:[#allocation21_spill] sm:$0xff] %v2971_v38  ;;  %3475 = vst [vmem:[#allocation22_spill] sm:$0xff] %v2976_v30 }
 0x113   :  { %3476 = vst [vmem:[#allocation23_spill] sm:$0xff] %v2980_v21  ;;  %3477 = vst [vmem:[#allocation24_spill] sm:$0xff] %v2984_v29 }
 0x115   :  { %v2138_v33 = vpop.f32.mrb[28].mxu0  ;;  %v2210_v32 = vpop.f32.mrb[28].mxu1 }
 0x116   :  { %v911_v43 = vpop.f32.mrb[29].mxu0  ;;  %v1199_v15 = vpop.f32.mrb[29].mxu1  ;;  %v2991_v11 = vadd.f32 %v2138_v33, %v2692_v52  ;;  %v2994_v4 = vadd.f32 %v2210_v32, %v2692_v52 }
 0x117   :  { %v2139_v16 = vpop.f32.mrb[30].mxu0  ;;  %v2211_v45 = vpop.f32.mrb[30].mxu1  ;;  %v2997_v25 = vadd.f32 %v2692_v52, %v911_v43  ;;  %v3000_v27 = vadd.f32 %v2692_v52, %v1199_v15 }
 0x118   :  { %v914_v54 = vpop.f32.mrb[31].mxu0  ;;  %v1202_v44 = vpop.f32.mrb[31].mxu1  ;;  %3478 = vst [vmem:[#allocation25_spill] sm:$0xff] %v2991_v11  ;;  %3479 = vst [vmem:[#allocation26_spill] sm:$0xff] %v2994_v4  ;;  %v3007_v62 = vadd.f32 %v2139_v16, %v2692_v52  ;;  %v3010_v57 = vadd.f32 %v2211_v45, %v2692_v52 }
 0x119   :  { %3480 = vst [vmem:[#allocation27_spill] sm:$0xff] %v2997_v25  ;;  %3481 = vst [vmem:[#allocation28_spill] sm:$0xff] %v3000_v27  ;;  %v3013_v33 = vadd.f32 %v2692_v52, %v914_v54  ;;  %v3016_v32 = vadd.f32 %v2692_v52, %v1202_v44 }
 0x11a   :  { %3482 = vst [vmem:[#allocation29_spill] sm:$0xff] %v3007_v62  ;;  %3483 = vst [vmem:[#allocation30_spill] sm:$0xff] %v3010_v57 }
 0x11b   :  { %3484 = vst [vmem:[#allocation31_spill] sm:$0xff] %v3013_v33  ;;  %3485 = vst [vmem:[#allocation32_spill] sm:$0xff] %v3016_v32 }
 0x11d   :  { %v2142_v49 = vpop.f32.mrb[32].mxu0  ;;  %v2214_v48 = vpop.f32.mrb[32].mxu1 }
 0x11e   :  { %v927_v5 = vpop.f32.mrb[33].mxu0  ;;  %v1215_v37 = vpop.f32.mrb[33].mxu1  ;;  %v3026_v54 = vadd.f32 %v2142_v49, %v2692_v52  ;;  %v3037_v49 = vadd.f32 %v2214_v48, %v2692_v52 }
 0x11f   :  { %v2986_v40 = vpop.f32.mrb[34].mxu0  ;;  %v2988_v34 = vpop.f32.mrb[34].mxu1  ;;  %v3040_v51 = vadd.f32 %v2692_v52, %v927_v5  ;;  %v3046_v16 = vadd.f32 %v2692_v52, %v1215_v37 }
 0x120   :  { %v3002_v10 = vpop.f32.mrb[35].mxu0  ;;  %v3004_v18 = vpop.f32.mrb[35].mxu1  ;;  %3486 = vst [vmem:[#allocation33_spill] sm:$0xff] %v3026_v54 }
 0x125   :  { %v2146_v45 = vpop.f32.mrb[36].mxu0  ;;  %v2218_v29 = vpop.f32.mrb[36].mxu1 }
 0x126   :  { %v952_v43 = vadd.f32 %v2146_v45, %v2692_v52  ;;  %v1240_v15 = vadd.f32 %v2218_v29, %v2692_v52  ;;  %v943_v56 = vpop.f32.mrb[37].mxu0  ;;  %v1231_v44 = vpop.f32.mrb[37].mxu1 }
 0x127   :  { %v944_v53 = vadd.f32 %v2692_v52, %v943_v56  ;;  %v1232_v32 = vadd.f32 %v2692_v52, %v1231_v44  ;;  %v2147_v48 = vpop.f32.mrb[38].mxu0  ;;  %v2219_v33 = vpop.f32.mrb[38].mxu1  ;;  %v3487_v56 = vmax.f32 %v2699_v55, 0.0  ;;  %v3488_v44 = vmax.f32 %v2706_v58, 0.0 }
 0x128   :  { %v1412_v57 = vmax.f32 %v952_v43, 0.0  ;;  %v1484_v5 = vmax.f32 %v1240_v15, 0.0  ;;  %v955_v62 = vadd.f32 %v2147_v48, %v2692_v52  ;;  %v1243_v45 = vadd.f32 %v2219_v33, %v2692_v52  ;;  %v946_v29 = vpop.f32.mrb[39].mxu0  ;;  %v1234_v27 = vpop.f32.mrb[39].mxu1 }
 0x129   :  { %v1410_v25 = vmax.f32 %v944_v53, 0.0  ;;  %v1482_v4 = vmax.f32 %v1232_v32, 0.0  ;;  %v947_v41 = vadd.f32 %v2692_v52, %v946_v29  ;;  %v1235_v37 = vadd.f32 %v2692_v52, %v1234_v27 }
 0x12a   :  { %v1520_v54 = vmax.f32 %v3487_v56, %v1412_v57  ;;  %v1556_v11 = vmax.f32 %v3488_v44, %v1484_v5  ;;  %v1413_v43 = vmax.f32 %v955_v62, 0.0  ;;  %v1485_v15 = vmax.f32 %v1243_v45, 0.0 }
 0x12b   :  { %v3489_v48 = vmax.f32 %v2709_v59, 0.0  ;;  %v3490_v33 = vmax.f32 %v2712_v60, 0.0  ;;  %v1411_v53 = vmax.f32 %v947_v41, 0.0  ;;  %v1483_v32 = vmax.f32 %v1235_v37, 0.0 }
 0x12c   :  { %v1480_v29 = vmax.f32 %v3037_v49, 0.0  ;;  %v1592_v38 = vmax.f32 %v1520_v54, %v1556_v11  ;;  %v3491_v27 = vmax.f32 %v2715_v61, 0.0  ;;  %v3492_v57 = vmax.f32 %v2723_v1, 0.0 }
 0x12d   :  { %v1518_v21 = vmax.f32 %v3489_v48, %v1410_v25  ;;  %v1554_v30 = vmax.f32 %v3490_v33, %v1482_v4  ;;  %v3069_v62 = vadd.f32 %v2986_v40, %v2692_v52  ;;  %v3493_v25 = vmax.f32 %v2726_v2, 0.0  ;;  %v2150_v5 = vpop.f32.mrb[40].mxu0  ;;  %v2222_v45 = vpop.f32.mrb[40].mxu1 }
 0x12e   :  { %v1521_v55 = vmax.f32 %v3491_v27, %v1413_v43  ;;  %v1557_v58 = vmax.f32 %v3492_v57, %v1485_v15  ;;  %v3494_v41 = vmax.f32 %v2729_v3, 0.0  ;;  %v1996_v11 = vpack.c.bf16 %v1592_v38, %v1592_v38  ;;  %v959_v37 = vpop.f32.mrb[41].mxu0  ;;  %v1247_v56 = vpop.f32.mrb[41].mxu1 }
 0x12f   :  { %v1590_v59 = vmax.f32 %v1518_v21, %v1554_v30  ;;  %v1519_v60 = vmax.f32 %v3493_v25, %v1411_v53  ;;  %v968_v61 = vadd.f32 %v2150_v5, %v2692_v52  ;;  %v1256_v1 = vadd.f32 %v2222_v45, %v2692_v52  ;;  %v2151_v21 = vpop.f32.mrb[42].mxu0  ;;  %v2223_v43 = vpop.f32.mrb[42].mxu1 }
 0x130   :  { %v1555_v4 = vmax.f32 %v3494_v41, %v1483_v32  ;;  %v1593_v54 = vmax.f32 %v1521_v55, %v1557_v58  ;;  %v960_v30 = vadd.f32 %v2692_v52, %v959_v37  ;;  %v1248_v2 = vadd.f32 %v2692_v52, %v1247_v56  ;;  %1773 = vst.msk [vmem:[%s3422_s3 + $0x8] sm:$0xf] %vm1770_vm3, %v1996_v11  ;;  %v962_v33 = vpop.f32.mrb[43].mxu0  ;;  %v1250_v53 = vpop.f32.mrb[43].mxu1 }
 0x131   :  { %v1994_v44 = vpack.c.bf16 %v1590_v59, %v1590_v59  ;;  %v1416_v38 = vmax.f32 %v968_v61, 0.0  ;;  %v1488_v15 = vmax.f32 %v1256_v1, 0.0  ;;  %v971_v48 = vadd.f32 %v2151_v21, %v2692_v52 }
 0x132   :  { %v1591_v40 = vmax.f32 %v1519_v60, %v1555_v4  ;;  %v1997_v3 = vpack.c.bf16 %v1593_v54, %v1593_v54  ;;  %v1414_v27 = vmax.f32 %v960_v30, 0.0  ;;  %v1486_v55 = vmax.f32 %v1248_v2, 0.0 }
 0x133   :  { %1771 = vst.msk [vmem:[%s3422_s3] sm:$0xf] %vm1770_vm3, %v1994_v44  ;;  %v1259_v57 = vadd.f32 %v2223_v43, %v2692_v52  ;;  %v3495_v58 = vmax.f32 %v2736_v6, 0.0  ;;  %v3496_v25 = vmax.f32 %v2739_v7, 0.0  ;;  %v1417_v41 = vmax.f32 %v971_v48, 0.0 }
 0x134   :  { %v1995_v32 = vpack.c.bf16 %v1591_v40, %v1591_v40  ;;  %1774 = vst.msk [vmem:[%s3422_s3 + $0xc] sm:$0xf] %vm1770_vm3, %v1997_v3  ;;  %v963_v4 = vadd.f32 %v2692_v52, %v962_v33  ;;  %v3497_v5 = vmax.f32 %v2742_v8, 0.0  ;;  %v3498_v11 = vmax.f32 %v2745_v9, 0.0 }
 0x135   :  { %v1524_v59 = vmax.f32 %v3495_v58, %v1416_v38  ;;  %v1560_v60 = vmax.f32 %v3496_v25, %v1488_v15  ;;  %v1489_v61 = vmax.f32 %v1259_v57, 0.0  ;;  %v1251_v6 = vadd.f32 %v2692_v52, %v1250_v53  ;;  %v2154_v21 = vpop.f32.mrb[44].mxu0  ;;  %v2226_v43 = vpop.f32.mrb[44].mxu1 }
 0x136   :  { %1772 = vst.msk [vmem:[%s3422_s3 + $0x4] sm:$0xf] %vm1770_vm3, %v1995_v32  ;;  %v1522_v45 = vmax.f32 %v3497_v5, %v1414_v27  ;;  %v1558_v54 = vmax.f32 %v3498_v11, %v1486_v55  ;;  %v3109_v7 = vadd.f32 %v2988_v34, %v2692_v52  ;;  %v3499_v37 = vmax.f32 %v2752_v12, 0.0  ;;  %v975_v12 = vpop.f32.mrb[45].mxu0  ;;  %v1263_v33 = vpop.f32.mrb[45].mxu1  ;;  %v3502_v27 = vld [vmem:[#allocation2_spill] sm:$0xff] }
 0x137   :  { %v1596_v1 = vmax.f32 %v1524_v59, %v1560_v60  ;;  %v1415_v44 = vmax.f32 %v963_v4, 0.0  ;;  %v1406_v40 = vmax.f32 %v3040_v51, 0.0  ;;  %v3500_v8 = vmax.f32 %v2755_v13, 0.0  ;;  %v2155_v58 = vpop.f32.mrb[46].mxu0  ;;  %v2227_v59 = vpop.f32.mrb[46].mxu1 }
 0x138   :  { %v1525_v56 = vmax.f32 %v3499_v37, %v1417_v41  ;;  %v1594_v30 = vmax.f32 %v1522_v45, %v1558_v54  ;;  %v1487_v9 = vmax.f32 %v1251_v6, 0.0  ;;  %v3501_v38 = vmax.f32 %v2758_v14, 0.0  ;;  %v978_v4 = vpop.f32.mrb[47].mxu0  ;;  %v1266_v5 = vpop.f32.mrb[47].mxu1  ;;  %v3504_v6 = vld [vmem:[#allocation3_spill] sm:$0xff] }
 0x139   :  { %v1561_v2 = vmax.f32 %v3500_v8, %v1489_v61  ;;  %v2000_v3 = vpack.c.bf16 %v1596_v1, %v1596_v1  ;;  %v984_v34 = vadd.f32 %v2154_v21, %v2692_v52  ;;  %v1272_v48 = vadd.f32 %v2226_v43, %v2692_v52 }
 0x13a   :  { %v1523_v15 = vmax.f32 %v3501_v38, %v1415_v44  ;;  %v1998_v53 = vpack.c.bf16 %v1594_v30, %v1594_v30  ;;  %v3503_v55 = vmax.f32 %v3502_v27, 0.0  ;;  %v976_v13 = vadd.f32 %v2692_v52, %v975_v12 }
 0x13b   :  { %v1597_v32 = vmax.f32 %v1525_v56, %v1561_v2  ;;  %1777 = vst.msk [vmem:[%s3422_s3 + $0x18] sm:$0xf] %vm1770_vm3, %v2000_v3  ;;  %v1420_v14 = vmax.f32 %v984_v34, 0.0  ;;  %v1492_v25 = vmax.f32 %v1272_v48, 0.0  ;;  %v1264_v60 = vadd.f32 %v2692_v52, %v1263_v33 }
 0x13c   :  { %v1559_v57 = vmax.f32 %v3503_v55, %v1487_v9  ;;  %v987_v41 = vadd.f32 %v2155_v58, %v2692_v52  ;;  %1775 = vst.msk [vmem:[%s3422_s3 + $0x10] sm:$0xf] %vm1770_vm3, %v1998_v53  ;;  %v1418_v54 = vmax.f32 %v976_v13, 0.0  ;;  %v1275_v61 = vadd.f32 %v2227_v59, %v2692_v52 }
 0x13d   :  { %v2001_v45 = vpack.c.bf16 %v1597_v32, %v1597_v32  ;;  %v3505_v1 = vmax.f32 %v3504_v6, 0.0  ;;  %v3506_v56 = vmax.f32 %v2787_v24, 0.0  ;;  %v1490_v30 = vmax.f32 %v1264_v60, 0.0  ;;  %v2158_v27 = vpop.f32.mrb[48].mxu0 }
 0x13e   :  { %v1595_v11 = vmax.f32 %v1523_v15, %v1559_v57  ;;  %v1421_v8 = vmax.f32 %v987_v41, 0.0  ;;  %v3507_v9 = vmax.f32 %v2791_v26, 0.0  ;;  %v1493_v43 = vmax.f32 %v1275_v61, 0.0  ;;  %v991_v59 = vpop.f32.mrb[49].mxu0 }
 0x13f   :  { %v1528_v37 = vmax.f32 %v3505_v1, %v1420_v14  ;;  %v1564_v44 = vmax.f32 %v3506_v56, %v1492_v25  ;;  %1778 = vst.msk [vmem:[%s3422_s3 + $0x1c] sm:$0xf] %vm1770_vm3, %v2001_v45  ;;  %v979_v3 = vadd.f32 %v2692_v52, %v978_v4  ;;  %v3508_v15 = vmax.f32 %v2795_v28, 0.0  ;;  %v3511_v25 = vld [vmem:[#allocation4_spill] sm:$0xff] }
 0x140   :  { %v1999_v2 = vpack.c.bf16 %v1595_v11, %v1595_v11  ;;  %v1526_v21 = vmax.f32 %v3507_v9, %v1418_v54  ;;  %v3509_v24 = vmax.f32 %v2799_v20, 0.0  ;;  %v1267_v12 = vadd.f32 %v2692_v52, %v1266_v5  ;;  %v2230_v20 = vpop.f32.mrb[48].mxu1  ;;  %v3513_v54 = vld [vmem:[#allocation5_spill] sm:$0xff] }
 0x141   :  { %v1600_v38 = vmax.f32 %v1528_v37, %v1564_v44  ;;  %v1562_v34 = vmax.f32 %v3508_v15, %v1490_v30  ;;  %v1478_v33 = vmax.f32 %v3046_v16, 0.0  ;;  %v3153_v53 = vadd.f32 %v2692_v52, %v3002_v10  ;;  %v1279_v14 = vpop.f32.mrb[49].mxu1 }
 0x142   :  { %v1529_v48 = vmax.f32 %v3509_v24, %v1421_v8  ;;  %1776 = vst.msk [vmem:[%s3422_s3 + $0x14] sm:$0xf] %vm1770_vm3, %v1999_v2  ;;  %v3510_v26 = vmax.f32 %v2808_v31, 0.0  ;;  %v1419_v32 = vmax.f32 %v979_v3, 0.0  ;;  %v1491_v13 = vmax.f32 %v1267_v12, 0.0  ;;  %v2159_v31 = vpop.f32.mrb[50].mxu0 }
 0x143   :  { %v2004_v55 = vpack.c.bf16 %v1600_v38, %v1600_v38  ;;  %v1598_v57 = vmax.f32 %v1526_v21, %v1562_v34  ;;  %v1000_v58 = vadd.f32 %v2158_v27, %v2692_v52  ;;  %v3512_v60 = vmax.f32 %v3511_v25, 0.0  ;;  %v2231_v45 = vpop.f32.mrb[50].mxu1  ;;  %v994_v56 = vpop.f32.mrb[51].mxu0 }
 0x144   :  { %v1565_v28 = vmax.f32 %v3510_v26, %v1493_v43  ;;  %v1288_v4 = vadd.f32 %v2230_v20, %v2692_v52  ;;  %v992_v5 = vadd.f32 %v2692_v52, %v991_v59  ;;  %v3514_v61 = vmax.f32 %v3513_v54, 0.0  ;;  %v1282_v44 = vpop.f32.mrb[51].mxu1 }
 0x145   :  { %v1527_v41 = vmax.f32 %v3512_v60, %v1419_v32  ;;  %1781 = vst.msk [vmem:[%s3422_s3 + $0x28] sm:$0xf] %vm1770_vm3, %v2004_v55  ;;  %v2002_v11 = vpack.c.bf16 %v1598_v57, %v1598_v57  ;;  %v1424_v1 = vmax.f32 %v1000_v58, 0.0  ;;  %v1280_v37 = vadd.f32 %v2692_v52, %v1279_v14  ;;  %v2234_v25 = vpop.f32.mrb[52].mxu1 }
 0x146   :  { %v1601_v10 = vmax.f32 %v1529_v48, %v1565_v28  ;;  %v1563_v6 = vmax.f32 %v3514_v61, %v1491_v13  ;;  %v1496_v8 = vmax.f32 %v1288_v4, 0.0  ;;  %v1422_v2 = vmax.f32 %v992_v5, 0.0  ;;  %v3524_v61 = vld [vmem:[#allocation9_spill] sm:$0xff] }
 0x147   :  { %v1003_v9 = vadd.f32 %v2159_v31, %v2692_v52  ;;  %1779 = vst.msk [vmem:[%s3422_s3 + $0x20] sm:$0xf] %vm1770_vm3, %v2002_v11  ;;  %v3515_v43 = vmax.f32 %v2824_v19, 0.0  ;;  %v1494_v38 = vmax.f32 %v1280_v37, 0.0  ;;  %v1291_v15 = vadd.f32 %v2231_v45, %v2692_v52  ;;  %v3518_v19 = vld [vmem:[#allocation6_spill] sm:$0xff]  ;;  %v1295_v11 = vpop.f32.mrb[53].mxu1 }
 0x148   :  { %v2005_v30 = vpack.c.bf16 %v1601_v10, %v1601_v10  ;;  %v1599_v21 = vmax.f32 %v1527_v41, %v1563_v6  ;;  %v3516_v34 = vmax.f32 %v2828_v35, 0.0  ;;  %v3517_v48 = vmax.f32 %v2832_v36, 0.0  ;;  %v3520_v35 = vld [vmem:[#allocation7_spill] sm:$0xff]  ;;  %v2162_v10 = vpop.f32.mrb[52].mxu0  ;;  %v3522_v41 = vld [vmem:[#allocation8_spill] sm:$0xff] }
 0x149   :  { %v1532_v3 = vmax.f32 %v3515_v43, %v1424_v1  ;;  %v1425_v26 = vmax.f32 %v1003_v9, 0.0  ;;  %v995_v28 = vadd.f32 %v2692_v52, %v994_v56  ;;  %v3519_v27 = vmax.f32 %v3518_v19, 0.0  ;;  %v1007_v45 = vpop.f32.mrb[53].mxu0  ;;  %v3526_v9 = vld [vmem:[#allocation10_spill] sm:$0xff] }
 0x14a   :  { %1782 = vst.msk [vmem:[%s3422_s3 + $0x2c] sm:$0xf] %vm1770_vm3, %v2005_v30  ;;  %v1568_v24 = vmax.f32 %v3516_v34, %v1496_v8  ;;  %v1530_v12 = vmax.f32 %v3517_v48, %v1422_v2  ;;  %v2003_v32 = vpack.c.bf16 %v1599_v21, %v1599_v21  ;;  %v1497_v55 = vmax.f32 %v1291_v15, 0.0  ;;  %v2235_v30 = vpop.f32.mrb[54].mxu1 }
 0x14b   :  { %v1566_v20 = vmax.f32 %v3519_v27, %v1494_v38  ;;  %v1283_v57 = vadd.f32 %v2692_v52, %v1282_v44  ;;  %v3195_v13 = vadd.f32 %v2692_v52, %v3004_v18  ;;  %v3521_v59 = vmax.f32 %v3520_v35, 0.0  ;;  %v2163_v44 = vpop.f32.mrb[54].mxu0  ;;  %v1298_v15 = vpop.f32.mrb[55].mxu1 }
 0x14c   :  { %v1604_v58 = vmax.f32 %v1532_v3, %v1568_v24  ;;  %v1423_v36 = vmax.f32 %v995_v28, 0.0  ;;  %1780 = vst.msk [vmem:[%s3422_s3 + $0x24] sm:$0xf] %vm1770_vm3, %v2003_v32  ;;  %v3523_v4 = vmax.f32 %v3522_v41, 0.0  ;;  %v1016_v18 = vadd.f32 %v2162_v10, %v2692_v52  ;;  %v1010_v38 = vpop.f32.mrb[55].mxu0  ;;  %v3528_v32 = vld [vmem:[#allocation11_spill] sm:$0xff] }
 0x14d   :  { %v1533_v14 = vmax.f32 %v3521_v59, %v1425_v26  ;;  %v1602_v60 = vmax.f32 %v1530_v12, %v1566_v20  ;;  %v1495_v31 = vmax.f32 %v1283_v57, 0.0  ;;  %v3525_v6 = vmax.f32 %v3524_v61, 0.0 }
 0x14e   :  { %v1569_v5 = vmax.f32 %v3523_v4, %v1497_v55  ;;  %v2008_v54 = vpack.c.bf16 %v1604_v58, %v1604_v58  ;;  %v1304_v37 = vadd.f32 %v2234_v25, %v2692_v52  ;;  %v1008_v56 = vadd.f32 %v2692_v52, %v1007_v45  ;;  %v2238_v45 = vpop.f32.mrb[56].mxu1 }
 0x14f   :  { %v1531_v1 = vmax.f32 %v3525_v6, %v1423_v36  ;;  %v2006_v8 = vpack.c.bf16 %v1602_v60, %v1602_v60  ;;  %v3527_v21 = vmax.f32 %v3526_v9, 0.0  ;;  %v1428_v3 = vmax.f32 %v1016_v18, 0.0  ;;  %v2166_v18 = vpop.f32.mrb[56].mxu0 }
 0x150   :  { %v1605_v2 = vmax.f32 %v1533_v14, %v1569_v5  ;;  %1785 = vst.msk [vmem:[%s3422_s3 + $0x38] sm:$0xf] %vm1770_vm3, %v2008_v54  ;;  %v1500_v34 = vmax.f32 %v1304_v37, 0.0  ;;  %v1426_v24 = vmax.f32 %v1008_v56, 0.0  ;;  %v1296_v48 = vadd.f32 %v2692_v52, %v1295_v11  ;;  %v1023_v37 = vpop.f32.mrb[57].mxu0 }
 0x151   :  { %v1567_v43 = vmax.f32 %v3527_v21, %v1495_v31  ;;  %v1019_v12 = vadd.f32 %v2163_v44, %v2692_v52  ;;  %1783 = vst.msk [vmem:[%s3422_s3 + $0x30] sm:$0xf] %vm1770_vm3, %v2006_v8  ;;  %v3529_v19 = vmax.f32 %v3528_v32, 0.0  ;;  %v1307_v20 = vadd.f32 %v2235_v30, %v2692_v52  ;;  %v2167_v8 = vpop.f32.mrb[58].mxu0  ;;  %v3535_v21 = vld [vmem:[#allocation12_spill] sm:$0xff] }
 0x152   :  { %v2009_v26 = vpack.c.bf16 %v1605_v2, %v1605_v2  ;;  %v3530_v55 = vmax.f32 %v2879_v46, 0.0  ;;  %v3531_v58 = vmax.f32 %v2883_v17, 0.0  ;;  %v1498_v59 = vmax.f32 %v1296_v48, 0.0 }
 0x153   :  { %v1603_v28 = vmax.f32 %v1531_v1, %v1567_v43  ;;  %v1536_v27 = vmax.f32 %v3529_v19, %v1428_v3  ;;  %v1429_v14 = vmax.f32 %v1019_v12, 0.0  ;;  %v1501_v10 = vmax.f32 %v1307_v20, 0.0 }
 0x154   :  { %v1572_v57 = vmax.f32 %v3530_v55, %v1500_v34  ;;  %v1534_v35 = vmax.f32 %v3531_v58, %v1426_v24  ;;  %1786 = vst.msk [vmem:[%s3422_s3 + $0x3c] sm:$0xf] %vm1770_vm3, %v2009_v26  ;;  %v1011_v25 = vadd.f32 %v2692_v52, %v1010_v38  ;;  %v1299_v60 = vadd.f32 %v2692_v52, %v1298_v15  ;;  %v1026_v24 = vpop.f32.mrb[59].mxu0 }
 0x155   :  { %v2007_v36 = vpack.c.bf16 %v1603_v28, %v1603_v28  ;;  %v1409_v41 = vmax.f32 %v3069_v62, 0.0  ;;  %v3532_v4 = vmax.f32 %v2887_v0, 0.0  ;;  %v3533_v5 = vmax.f32 %v2891_v23, 0.0  ;;  %v1311_v0 = vpop.f32.mrb[57].mxu1 }
 0x156   :  { %v1608_v46 = vmax.f32 %v1536_v27, %v1572_v57  ;;  %v3534_v11 = vmax.f32 %v2896_v47, 0.0  ;;  %v1427_v61 = vmax.f32 %v1011_v25, 0.0  ;;  %v1499_v6 = vmax.f32 %v1299_v60, 0.0  ;;  %v2239_v2 = vpop.f32.mrb[58].mxu1  ;;  %v3537_v47 = vld [vmem:[#allocation13_spill] sm:$0xff] }
 0x157   :  { %v1570_v17 = vmax.f32 %v3532_v4, %v1498_v59  ;;  %v1537_v31 = vmax.f32 %v3533_v5, %v1429_v14  ;;  %1784 = vst.msk [vmem:[%s3422_s3 + $0x34] sm:$0xf] %vm1770_vm3, %v2007_v36  ;;  %v1032_v1 = vadd.f32 %v2166_v18, %v2692_v52  ;;  %v1320_v23 = vadd.f32 %v2238_v45, %v2692_v52  ;;  %v1314_v48 = vpop.f32.mrb[59].mxu1  ;;  %v3541_v59 = vld [vmem:[#allocation14_spill] sm:$0xff]  ;;  %v3543_v5 = vld [vmem:[#allocation15_spill] sm:$0xff] }
 0x158   :  { %v1573_v54 = vmax.f32 %v3534_v11, %v1501_v10  ;;  %v2012_v56 = vpack.c.bf16 %v1608_v46, %v1608_v46  ;;  %v1024_v30 = vadd.f32 %v2692_v52, %v1023_v37  ;;  %v3536_v43 = vmax.f32 %v3535_v21, 0.0  ;;  %v2170_v11 = vpop.f32.mrb[60].mxu0 }
 0x159   :  { %v1606_v44 = vmax.f32 %v1534_v35, %v1570_v17  ;;  %v3538_v38 = vmax.f32 %v3537_v47, 0.0  ;;  %v1432_v34 = vmax.f32 %v1032_v1, 0.0  ;;  %v1504_v26 = vmax.f32 %v1320_v23, 0.0 }
 0x15a   :  { %v1609_v9 = vmax.f32 %v1537_v31, %v1573_v54  ;;  %v1535_v3 = vmax.f32 %v3536_v43, %v1427_v61  ;;  %1789 = vst.msk [vmem:[%s3422_s3 + $0x48] sm:$0xf] %vm1770_vm3, %v2012_v56  ;;  %v1430_v28 = vmax.f32 %v1024_v30, 0.0  ;;  %v1312_v32 = vadd.f32 %v2692_v52, %v1311_v0  ;;  %v2242_v54 = vpop.f32.mrb[60].mxu1  ;;  %v3545_v61 = vld [vmem:[#allocation16_spill] sm:$0xff] }
 0x15b   :  { %v1571_v15 = vmax.f32 %v3538_v38, %v1499_v6  ;;  %v2010_v12 = vpack.c.bf16 %v1606_v44, %v1606_v44  ;;  %v3539_v20 = vmax.f32 %v2908_v50, 0.0  ;;  %v1035_v57 = vadd.f32 %v2167_v8, %v2692_v52  ;;  %v1039_v44 = vpop.f32.mrb[61].mxu0  ;;  %v1327_v23 = vpop.f32.mrb[61].mxu1  ;;  %v3549_v38 = vld [vmem:[#allocation18_spill] sm:$0xff] }
 0x15c   :  { %v2013_v19 = vpack.c.bf16 %v1609_v9, %v1609_v9  ;;  %v3540_v58 = vmax.f32 %v2912_v42, 0.0  ;;  %v3542_v14 = vmax.f32 %v3541_v59, 0.0  ;;  %v1502_v10 = vmax.f32 %v1312_v32, 0.0  ;;  %v2243_v47 = vpop.f32.mrb[62].mxu1 }
 0x15d   :  { %v1607_v27 = vmax.f32 %v1535_v3, %v1571_v15  ;;  %v1540_v55 = vmax.f32 %v3539_v20, %v1432_v34  ;;  %1787 = vst.msk [vmem:[%s3422_s3 + $0x40] sm:$0xf] %vm1770_vm3, %v2010_v12  ;;  %v1323_v25 = vadd.f32 %v2239_v2, %v2692_v52  ;;  %v1433_v60 = vmax.f32 %v1035_v57, 0.0  ;;  %v3547_v2 = vld [vmem:[#allocation17_spill] sm:$0xff]  ;;  %v2171_v3 = vpop.f32.mrb[62].mxu0 }
 0x15e   :  { %v1576_v35 = vmax.f32 %v3540_v58, %v1504_v26  ;;  %v1538_v36 = vmax.f32 %v3542_v14, %v1430_v28  ;;  %1790 = vst.msk [vmem:[%s3422_s3 + $0x4c] sm:$0xf] %vm1770_vm3, %v2013_v19  ;;  %v1027_v46 = vadd.f32 %v2692_v52, %v1026_v24  ;;  %v1315_v4 = vadd.f32 %v2692_v52, %v1314_v48  ;;  %v3551_v24 = vld [vmem:[#allocation19_spill] sm:$0xff]  ;;  %v1042_v32 = vpop.f32.mrb[63].mxu0  ;;  %v1330_v19 = vpop.f32.mrb[63].mxu1 }
 0x15f   :  { %v2011_v50 = vpack.c.bf16 %v1607_v27, %v1607_v27  ;;  %v1481_v42 = vmax.f32 %v3109_v7, 0.0  ;;  %v3544_v31 = vmax.f32 %v3543_v5, 0.0  ;;  %v1505_v45 = vmax.f32 %v1323_v25, 0.0 }
 0x160   :  { %v1612_v17 = vmax.f32 %v1540_v55, %v1576_v35  ;;  %v3546_v6 = vmax.f32 %v3545_v61, 0.0  ;;  %v1431_v37 = vmax.f32 %v1027_v46, 0.0  ;;  %v1503_v0 = vmax.f32 %v1315_v4, 0.0  ;;  %v3553_v35 = vld [vmem:[#allocation20_spill] sm:$0xff] }
 0x161   :  { %v1574_v18 = vmax.f32 %v3544_v31, %v1502_v10  ;;  %1788 = vst.msk [vmem:[%s3422_s3 + $0x44] sm:$0xf] %vm1770_vm3, %v2011_v50  ;;  %v1048_v56 = vadd.f32 %v2170_v11, %v2692_v52  ;;  %v3548_v9 = vmax.f32 %v3547_v2, 0.0  ;;  %v1336_v43 = vadd.f32 %v2242_v54, %v2692_v52 }
 0x162   :  { %v1541_v1 = vmax.f32 %v3546_v6, %v1433_v60  ;;  %v2016_v30 = vpack.c.bf16 %v1612_v17, %v1612_v17  ;;  %v3550_v15 = vmax.f32 %v3549_v38, 0.0  ;;  %v3552_v48 = vmax.f32 %v3551_v24, 0.0 }
 0x163   :  { %v1610_v8 = vmax.f32 %v1538_v36, %v1574_v18  ;;  %v1577_v21 = vmax.f32 %v3548_v9, %v1505_v45  ;;  %v1436_v26 = vmax.f32 %v1048_v56, 0.0  ;;  %v1040_v28 = vadd.f32 %v2692_v52, %v1039_v44 }
 0x164   :  { %v1539_v34 = vmax.f32 %v3550_v15, %v1431_v37  ;;  %v1575_v12 = vmax.f32 %v3552_v48, %v1503_v0  ;;  %1793 = vst.msk [vmem:[%s3422_s3 + $0x58] sm:$0xf] %vm1770_vm3, %v2016_v30  ;;  %v1508_v55 = vmax.f32 %v1336_v43, 0.0  ;;  %v1328_v57 = vadd.f32 %v2692_v52, %v1327_v23  ;;  %v2246_v37 = vpop.f32.mrb[64].mxu1 }
 0x165   :  { %v2014_v27 = vpack.c.bf16 %v1610_v8, %v1610_v8  ;;  %v1613_v20 = vmax.f32 %v1541_v1, %v1577_v21  ;;  %v3554_v59 = vmax.f32 %v3553_v35, 0.0  ;;  %v1434_v36 = vmax.f32 %v1040_v28, 0.0  ;;  %v2174_v1 = vpop.f32.mrb[64].mxu0  ;;  %v1343_v8 = vpop.f32.mrb[65].mxu1  ;;  %v3560_v21 = vld [vmem:[#allocation22_spill] sm:$0xff] }
 0x166   :  { %v1611_v58 = vmax.f32 %v1539_v34, %v1575_v12  ;;  %v1051_v10 = vadd.f32 %v2171_v3, %v2692_v52  ;;  %v3555_v50 = vmax.f32 %v2959_v22, 0.0  ;;  %v1506_v46 = vmax.f32 %v1328_v57, 0.0  ;;  %v2247_v15 = vpop.f32.mrb[66].mxu1  ;;  %v3562_v34 = vld [vmem:[#allocation23_spill] sm:$0xff] }
 0x167   :  { %v1544_v14 = vmax.f32 %v3554_v59, %v1436_v26  ;;  %1791 = vst.msk [vmem:[%s3422_s3 + $0x50] sm:$0xf] %vm1770_vm3, %v2014_v27  ;;  %v2017_v25 = vpack.c.bf16 %v1613_v20, %v1613_v20  ;;  %v1339_v4 = vadd.f32 %v2243_v47, %v2692_v52  ;;  %v3556_v5 = vmax.f32 %v2963_v63, 0.0  ;;  %v3558_v63 = vld [vmem:[#allocation21_spill] sm:$0xff] }
 0x168   :  { %v1580_v60 = vmax.f32 %v3555_v50, %v1508_v55  ;;  %v2015_v17 = vpack.c.bf16 %v1611_v58, %v1611_v58  ;;  %v1437_v18 = vmax.f32 %v1051_v10, 0.0  ;;  %v1043_v45 = vadd.f32 %v2692_v52, %v1042_v32  ;;  %v3564_v55 = vld [vmem:[#allocation24_spill] sm:$0xff]  ;;  %v3566_v59 = vld [vmem:[#allocation25_spill] sm:$0xff]  ;;  %v3568_v10 = vld [vmem:[#allocation26_spill] sm:$0xff] }
 0x169   :  { %v1542_v31 = vmax.f32 %v3556_v5, %v1434_v36  ;;  %1794 = vst.msk [vmem:[%s3422_s3 + $0x5c] sm:$0xf] %vm1770_vm3, %v2017_v25  ;;  %v3557_v54 = vmax.f32 %v2967_v39, 0.0  ;;  %v1509_v61 = vmax.f32 %v1339_v4, 0.0  ;;  %v1331_v6 = vadd.f32 %v2692_v52, %v1330_v19  ;;  %v1055_v39 = vpop.f32.mrb[65].mxu0  ;;  %v1346_v19 = vpop.f32.mrb[67].mxu1 }
 0x16a   :  { %v1616_v11 = vmax.f32 %v1544_v14, %v1580_v60  ;;  %1792 = vst.msk [vmem:[%s3422_s3 + $0x54] sm:$0xf] %vm1770_vm3, %v2015_v17  ;;  %v3559_v0 = vmax.f32 %v3558_v63, 0.0  ;;  %v1435_v44 = vmax.f32 %v1043_v45, 0.0  ;;  %v1064_v23 = vadd.f32 %v2174_v1, %v2692_v52  ;;  %v2175_v38 = vpop.f32.mrb[66].mxu0  ;;  %v3570_v45 = vld [vmem:[#allocation27_spill] sm:$0xff] }
 0x16b   :  { %v1578_v22 = vmax.f32 %v3557_v54, %v1506_v46  ;;  %v1352_v30 = vadd.f32 %v2246_v37, %v2692_v52  ;;  %v3561_v43 = vmax.f32 %v3560_v21, 0.0  ;;  %v1507_v47 = vmax.f32 %v1331_v6, 0.0  ;;  %v1058_v32 = vpop.f32.mrb[67].mxu0  ;;  %v3572_v1 = vld [vmem:[#allocation28_spill] sm:$0xff] }
 0x16c   :  { %v1545_v56 = vmax.f32 %v3559_v0, %v1437_v18  ;;  %v2020_v2 = vpack.c.bf16 %v1616_v11, %v1616_v11  ;;  %v3563_v24 = vmax.f32 %v3562_v34, 0.0  ;;  %v1440_v12 = vmax.f32 %v1064_v23, 0.0  ;;  %v2178_v23 = vpop.f32.mrb[68].mxu0 }
 0x16d   :  { %v1614_v9 = vmax.f32 %v1542_v31, %v1578_v22  ;;  %v1581_v3 = vmax.f32 %v3561_v43, %v1509_v61  ;;  %v1512_v26 = vmax.f32 %v1352_v30, 0.0  ;;  %v1056_v28 = vadd.f32 %v2692_v52, %v1055_v39  ;;  %v2250_v30 = vpop.f32.mrb[68].mxu1  ;;  %v1071_v43 = vpop.f32.mrb[69].mxu0 }
 0x16e   :  { %v1543_v48 = vmax.f32 %v3563_v24, %v1435_v44  ;;  %1797 = vst.msk [vmem:[%s3422_s3 + $0x68] sm:$0xf] %vm1770_vm3, %v2020_v2  ;;  %v3565_v57 = vmax.f32 %v3564_v55, 0.0  ;;  %v1344_v35 = vadd.f32 %v2692_v52, %v1343_v8  ;;  %v3567_v14 = vmax.f32 %v3566_v59, 0.0  ;;  %v3574_v8 = vld [vmem:[#allocation29_spill] sm:$0xff] }
 0x16f   :  { %v2018_v27 = vpack.c.bf16 %v1614_v9, %v1614_v9  ;;  %v1617_v20 = vmax.f32 %v1545_v56, %v1581_v3  ;;  %v3569_v25 = vmax.f32 %v3568_v10, 0.0  ;;  %v1438_v60 = vmax.f32 %v1056_v28, 0.0  ;;  %v2331_v56 = vld [vmem:[%s3421_s2] ss:$0 sm:$0xff]  ;;  %v1359_v3 = vpop.f32.mrb[69].mxu1  ;;  %v3578_v28 = vld [vmem:[#allocation31_spill] sm:$0xff] }
 0x170   :  { %v1579_v58 = vmax.f32 %v3565_v57, %v1507_v47  ;;  %v1548_v36 = vmax.f32 %v3567_v14, %v1440_v12  ;;  %v1067_v46 = vadd.f32 %v2175_v38, %v2692_v52  ;;  %v1510_v5 = vmax.f32 %v1344_v35, 0.0  ;;  %v3576_v38 = vld [vmem:[#allocation30_spill] sm:$0xff]  ;;  %v2179_v12 = vpop.f32.mrb[70].mxu0  ;;  %v3580_v14 = vld [vmem:[#allocation32_spill] sm:$0xff] }
 0x171   :  { %v1584_v50 = vmax.f32 %v3569_v25, %v1512_v26  ;;  %1795 = vst.msk [vmem:[%s3422_s3 + $0x60] sm:$0xf] %vm1770_vm3, %v2018_v27  ;;  %v2021_v4 = vpack.c.bf16 %v1617_v20, %v1617_v20  ;;  %v1355_v31 = vadd.f32 %v2247_v15, %v2692_v52  ;;  %v3571_v11 = vmax.f32 %v3570_v45, 0.0  ;;  %v2251_v26 = vpop.f32.mrb[70].mxu1  ;;  %v1074_v57 = vpop.f32.mrb[71].mxu0 }
 0x172   :  { %v1615_v17 = vmax.f32 %v1543_v48, %v1579_v58  ;;  %v1441_v22 = vmax.f32 %v1067_v46, 0.0  ;;  %v1059_v61 = vadd.f32 %v2692_v52, %v1058_v32  ;;  %v3573_v37 = vmax.f32 %v3572_v1, 0.0  ;;  %v1362_v58 = vpop.f32.mrb[71].mxu1 }
 0x173   :  { %v1620_v18 = vmax.f32 %v1548_v36, %v1584_v50  ;;  %v1546_v54 = vmax.f32 %v3571_v11, %v1438_v60  ;;  %1798 = vst.msk [vmem:[%s3422_s3 + $0x6c] sm:$0xf] %vm1770_vm3, %v2021_v4  ;;  %v1513_v0 = vmax.f32 %v1355_v31, 0.0  ;;  %v1347_v44 = vadd.f32 %v2331_v56, %v1346_v19  ;;  %v3582_v50 = vld [vmem:[#allocation33_spill] sm:$0xff] }
 0x174   :  { %v2019_v6 = vpack.c.bf16 %v1615_v17, %v1615_v17  ;;  %v1582_v63 = vmax.f32 %v3573_v37, %v1510_v5  ;;  %v3575_v52 = vmax.f32 %v3574_v8, 0.0  ;;  %v1439_v9 = vmax.f32 %v1059_v61, 0.0 }
 0x175   :  { %v2024_v39 = vpack.c.bf16 %v1620_v18, %v1620_v18  ;;  %v1080_v21 = vadd.f32 %v2331_v56, %v2178_v23  ;;  %v3577_v15 = vmax.f32 %v3576_v38, 0.0  ;;  %v1511_v24 = vmax.f32 %v1347_v44, 0.0 }
 0x176   :  { %v1549_v2 = vmax.f32 %v3575_v52, %v1441_v22  ;;  %1796 = vst.msk [vmem:[%s3422_s3 + $0x64] sm:$0xf] %vm1770_vm3, %v2019_v6  ;;  %v1618_v47 = vmax.f32 %v1546_v54, %v1582_v63  ;;  %v1368_v48 = vadd.f32 %v2331_v56, %v2250_v30  ;;  %v3579_v32 = vmax.f32 %v3578_v28, 0.0 }
 0x177   :  { %v1585_v34 = vmax.f32 %v3577_v15, %v1513_v0  ;;  %1801 = vst.msk [vmem:[%s3422_s3 + $0x78] sm:$0xf] %vm1770_vm3, %v2024_v39  ;;  %v1444_v27 = vmax.f32 %v1080_v21, 0.0  ;;  %v1072_v20 = vadd.f32 %v2331_v56, %v1071_v43  ;;  %v1360_v55 = vadd.f32 %v2331_v56, %v1359_v3 }
 0x178   :  { %v1547_v19 = vmax.f32 %v3579_v32, %v1439_v9  ;;  %v2022_v35 = vpack.c.bf16 %v1618_v47, %v1618_v47  ;;  %v3581_v36 = vmax.f32 %v3580_v14, 0.0  ;;  %v1516_v25 = vmax.f32 %v1368_v48, 0.0 }
 0x179   :  { %v1621_v59 = vmax.f32 %v1549_v2, %v1585_v34  ;;  %v3583_v60 = vmax.f32 %v3582_v50, 0.0  ;;  %v1442_v4 = vmax.f32 %v1072_v20, 0.0  ;;  %v1514_v17 = vmax.f32 %v1360_v55, 0.0 }
 0x17a   :  { %v1583_v10 = vmax.f32 %v3581_v36, %v1511_v24  ;;  %v1083_v5 = vadd.f32 %v2331_v56, %v2179_v12  ;;  %1799 = vst.msk [vmem:[%s3422_s3 + $0x70] sm:$0xf] %vm1770_vm3, %v2022_v35  ;;  %v1588_v45 = vmax.f32 %v1480_v29, %v1516_v25  ;;  %v1371_v11 = vadd.f32 %v2331_v56, %v2251_v26 }
 0x17b   :  { %v1552_v46 = vmax.f32 %v3583_v60, %v1444_v27  ;;  %v2025_v31 = vpack.c.bf16 %v1621_v59, %v1621_v59  ;;  %v1550_v54 = vmax.f32 %v1406_v40, %v1442_v4  ;;  %v1586_v22 = vmax.f32 %v1478_v33, %v1514_v17 }
 0x17c   :  { %v1619_v18 = vmax.f32 %v1547_v19, %v1583_v10  ;;  %v1445_v61 = vmax.f32 %v1083_v5, 0.0  ;;  %v1075_v6 = vadd.f32 %v2331_v56, %v1074_v57  ;;  %v1517_v63 = vmax.f32 %v1371_v11, 0.0 }
 0x17d   :  { %1802 = vst.msk [vmem:[%s3422_s3 + $0x7c] sm:$0xf] %vm1770_vm3, %v2025_v31  ;;  %v1624_v37 = vmax.f32 %v1552_v46, %v1588_v45  ;;  %v1363_v0 = vadd.f32 %v2331_v56, %v1362_v58  ;;  %v1407_v49 = vmax.f32 %v3153_v53, 0.0  ;;  %v1622_v29 = vmax.f32 %v1550_v54, %v1586_v22 }
 0x17e   :  { %v2023_v1 = vpack.c.bf16 %v1619_v18, %v1619_v18  ;;  %v1553_v51 = vmax.f32 %v1409_v41, %v1445_v61  ;;  %v1443_v40 = vmax.f32 %v1075_v6, 0.0  ;;  %v1479_v16 = vmax.f32 %v3195_v13, 0.0 }
 0x17f   :  { %v2028_v33 = vpack.c.bf16 %v1624_v37, %v1624_v37  ;;  %v1589_v44 = vmax.f32 %v1481_v42, %v1517_v63  ;;  %v1515_v23 = vmax.f32 %v1363_v0, 0.0  ;;  %v2026_v56 = vpack.c.bf16 %v1622_v29, %v1622_v29 }
 0x180   :  { %1800 = vst.msk [vmem:[%s3422_s3 + $0x74] sm:$0xf] %vm1770_vm3, %v2023_v1  ;;  %v1551_v30 = vmax.f32 %v1407_v49, %v1443_v40 }
 0x181   :  { %1805 = vst.msk [vmem:[%s3422_s3 + $0x88] sm:$0xf] %vm1770_vm3, %v2028_v33  ;;  %v1625_v62 = vmax.f32 %v1553_v51, %v1589_v44  ;;  %v1587_v53 = vmax.f32 %v1479_v16, %v1515_v23  ;;  %1803 = vst.msk [vmem:[%s3422_s3 + $0x80] sm:$0xf] %vm1770_vm3, %v2026_v56 }
 0x183   :  { %v2029_v13 = vpack.c.bf16 %v1625_v62, %v1625_v62  ;;  %v1623_v41 = vmax.f32 %v1551_v30, %v1587_v53 }
 0x185   :  { %1806 = vst.msk [vmem:[%s3422_s3 + $0x8c] sm:$0xf] %vm1770_vm3, %v2029_v13  ;;  %v2027_v7 = vpack.c.bf16 %v1623_v41, %v1623_v41 }
 0x187   :  { %1804 = vst.msk [vmem:[%s3422_s3 + $0x84] sm:$0xf] %vm1770_vm3, %v2027_v7 }

// kernel: lenet_forward.4
= control target key start
LH: loop header
LB: loop body
LE: loop exit
PB: predicated region body
PF: predicated region fallthrough
CT: control target
= control target key end

     0   :  { %v439_v0 = vmov 0   ;;  %vm186_vm0 = vcmask 179200   ;;  %vm211_vm1 = vcmask 1042432   ;;  %vm340_vm2 = vcmask 130048   ;;  %s565_s1 = inlined_call_operand.vmem [shape: bf16[150,16], index: 1, kind: input, shape index: {}]   ;;  %s566_s0 = inlined_call_operand.vmem [shape: bf16[128,150], index: 0, kind: input, shape index: {}]   ;;  %s567_s2 = inlined_call_operand.vmem [shape: f32[1,16], index: 2, kind: input, shape index: {}]   ;;  %s568_s3 = inlined_call_operand.vmem [shape: f32[32,16], index: 3, kind: output, shape index: {}]  }
   0x1   :  { %215 = vmatprep.subr.bf16.mxu0 %v439_v0  ;;  %384 = vmatprep.subr.bf16.mxu1 %v439_v0  ;;  %v405_v1 = vld [vmem:[%s565_s1] sm:$0xff]   ;;  %v406_v2 = vld [vmem:[%s565_s1 + $0x8] sm:$0xff]   ;;  %v407_v3 = vld [vmem:[%s565_s1 + $0x10] sm:$0xff]  }
   0x2   :  { %216 = vmatpush1.bf16.msra.mxu0 %v405_v1  ;;  %394 = vmatpush1.bf16.msra.mxu1 %v405_v1  ;;  %v408_v4 = vld [vmem:[%s565_s1 + $0x18] sm:$0xff]   ;;  %v417_v5 = vld [vmem:[%s566_s0 + $0x4] ss:$8 sps:$4 sm:$0xff]   ;;  %v411_v9 = vld [vmem:[%s565_s1 + $0x30] sm:$0xff]  }
   0x3   :  { %217 = vmatprep.subr.bf16.mxu0 %v439_v0  ;;  %385 = vmatprep.subr.bf16.mxu1 %v439_v0  ;;  %v420_v6 = vld [vmem:[%s566_s0 + $0x44] ss:$8 sps:$4 sm:$0xff]   ;;  %v412_v10 = vld [vmem:[%s565_s1 + $0x38] sm:$0xff]   ;;  %v414_v12 = vld [vmem:[%s565_s1 + $0x48] ss:$0 sps:$4 sm:$0x77]  }
   0x4   :  { %376 = vmatprep.mubr.msk.bf16.mxu0 %vm186_vm0, %v417_v5  ;;  %v409_v7 = vld [vmem:[%s565_s1 + $0x20] sm:$0xff]   ;;  %380 = vmatprep.mubr.msk.bf16.mxu1 %vm186_vm0, %v420_v6  ;;  %v410_v8 = vld [vmem:[%s565_s1 + $0x28] sm:$0xff]   ;;  %v213_v13 = vsel %vm211_vm1, %v414_v12, 0  ;;  %v421_v16 = vld [vmem:[%s566_s0 + $0x14] ss:$8 sps:$4 sm:$0xff]  }
   0x5   :  { %v413_v11 = vld [vmem:[%s565_s1 + $0x40] sm:$0xff]   ;;  %v423_v17 = vld [vmem:[%s566_s0 + $0x54] ss:$8 sps:$4 sm:$0xff]   ;;  %v425_v18 = vld [vmem:[%s566_s0 + $0x10] ss:$8 sps:$4 sm:$0xff]  }
   0x6   :  { %218 = vmatpush1.bf16.msra.mxu0 %v406_v2  ;;  %395 = vmatpush1.bf16.msra.mxu1 %v406_v2  ;;  %v415_v14 = vld [vmem:[%s566_s0] ss:$8 sps:$4 sm:$0xff]   ;;  %v426_v19 = vld [vmem:[%s566_s0 + $0x50] ss:$8 sps:$4 sm:$0xff]   ;;  %v427_v20 = vld [vmem:[%s566_s0 + $0x24] ss:$8 sps:$4 sm:$0xff]  }
   0x7   :  { %219 = vmatprep.subr.bf16.mxu0 %v439_v0  ;;  %386 = vmatprep.subr.bf16.mxu1 %v439_v0  ;;  %v418_v15 = vld [vmem:[%s566_s0 + $0x40] ss:$8 sps:$4 sm:$0xff]   ;;  %v429_v21 = vld [vmem:[%s566_s0 + $0x64] ss:$8 sps:$4 sm:$0xff]   ;;  %v433_v24 = vld [vmem:[%s566_s0 + $0x34] ss:$8 sps:$4 sm:$0xff]  }
   0x8   :  { %v431_v22 = vld [vmem:[%s566_s0 + $0x20] ss:$8 sps:$4 sm:$0xff]   ;;  %v435_v25 = vld [vmem:[%s566_s0 + $0x74] ss:$8 sps:$4 sm:$0xff]   ;;  %v437_v26 = vld [vmem:[%s566_s0 + $0x30] ss:$8 sps:$4 sm:$0xff]  }
   0x9   :  { %v432_v23 = vld [vmem:[%s566_s0 + $0x60] ss:$8 sps:$4 sm:$0xff]   ;;  %v438_v27 = vld [vmem:[%s566_s0 + $0x70] ss:$8 sps:$4 sm:$0xff]  }
   0xa   :  { %220 = vmatpush1.bf16.msra.mxu0 %v407_v3  ;;  %396 = vmatpush1.bf16.msra.mxu1 %v407_v3  ;;  %v349_v42 = vld [vmem:[%s567_s2] ss:$0 sm:$0xff] }
   0xb   :  { %221 = vmatprep.subr.bf16.mxu0 %v439_v0  ;;  %387 = vmatprep.subr.bf16.mxu1 %v439_v0 }
   0xe   :  { %222 = vmatpush1.bf16.msra.mxu0 %v408_v4  ;;  %397 = vmatpush1.bf16.msra.mxu1 %v408_v4 }
   0xf   :  { %223 = vmatprep.subr.bf16.mxu0 %v439_v0  ;;  %388 = vmatprep.subr.bf16.mxu1 %v439_v0 }
  0x12   :  { %224 = vmatpush1.bf16.msra.mxu0 %v409_v7  ;;  %398 = vmatpush1.bf16.msra.mxu1 %v409_v7 }
  0x13   :  { %225 = vmatprep.subr.bf16.mxu0 %v439_v0  ;;  %389 = vmatprep.subr.bf16.mxu1 %v439_v0 }
  0x16   :  { %226 = vmatpush1.bf16.msra.mxu0 %v410_v8  ;;  %399 = vmatpush1.bf16.msra.mxu1 %v410_v8 }
  0x17   :  { %227 = vmatprep.subr.bf16.mxu0 %v439_v0  ;;  %390 = vmatprep.subr.bf16.mxu1 %v439_v0 }
  0x1a   :  { %228 = vmatpush1.bf16.msra.mxu0 %v411_v9  ;;  %400 = vmatpush1.bf16.msra.mxu1 %v411_v9 }
  0x1b   :  { %229 = vmatprep.subr.bf16.mxu0 %v439_v0  ;;  %391 = vmatprep.subr.bf16.mxu1 %v439_v0 }
  0x1e   :  { %230 = vmatpush1.bf16.msra.mxu0 %v412_v10  ;;  %401 = vmatpush1.bf16.msra.mxu1 %v412_v10 }
  0x1f   :  { %231 = vmatprep.subr.bf16.mxu0 %v439_v0  ;;  %392 = vmatprep.subr.bf16.mxu1 %v439_v0 }
  0x22   :  { %232 = vmatpush1.bf16.msra.mxu0 %v413_v11  ;;  %402 = vmatpush1.bf16.msra.mxu1 %v413_v11 }
  0x23   :  { %233 = vmatprep.subr.bf16.mxu0 %v439_v0  ;;  %393 = vmatprep.subr.bf16.mxu1 %v439_v0 }
  0x26   :  { %234 = vmatpush1.bf16.msra.mxu0 %v213_v13  ;;  %403 = vmatpush1.bf16.msra.mxu1 %v213_v13 }
  0x29   :  { %248 = vmatmul.mubr.bf16.vlgmr.msra.gmra.mrb[0].mxu0 %v415_v14  ;;  %280 = vmatmul.mubr.bf16.vlgmr.msra.gmra.mrb[0].mxu1 %v418_v15 }
  0x2a   :  { %377 = vmatprep.mubr.msk.bf16.mxu0 %vm186_vm0, %v421_v16  ;;  %381 = vmatprep.mubr.msk.bf16.mxu1 %vm186_vm0, %v423_v17 }
  0x31   :  { %256 = vmatmul.mubr.bf16.gmra.mrb[4].mxu0 %v425_v18  ;;  %288 = vmatmul.mubr.bf16.gmra.mrb[4].mxu1 %v426_v19 }
  0x32   :  { %378 = vmatprep.mubr.msk.bf16.mxu0 %vm186_vm0, %v427_v20  ;;  %382 = vmatprep.mubr.msk.bf16.mxu1 %vm186_vm0, %v429_v21 }
  0x39   :  { %264 = vmatmul.mubr.bf16.gmra.mrb[8].mxu0 %v431_v22  ;;  %296 = vmatmul.mubr.bf16.gmra.mrb[8].mxu1 %v432_v23 }
  0x3a   :  { %379 = vmatprep.mubr.msk.bf16.mxu0 %vm186_vm0, %v433_v24  ;;  %383 = vmatprep.mubr.msk.bf16.mxu1 %vm186_vm0, %v435_v25 }
  0x41   :  { %272 = vmatmul.mubr.bf16.gmra.mrb[12].mxu0 %v437_v26  ;;  %304 = vmatmul.mubr.bf16.gmra.mrb[12].mxu1 %v438_v27 }
  0xfc   :  { %v249_v28 = vpop.f32.mrb[0].mxu0  ;;  %v281_v29 = vpop.f32.mrb[0].mxu1 }
  0xfd   :  { %v251_v30 = vpop.f32.mrb[1].mxu0  ;;  %v283_v31 = vpop.f32.mrb[1].mxu1  ;;  %v250_v45 = vadd.f32 %v349_v42, %v249_v28  ;;  %v282_v46 = vadd.f32 %v349_v42, %v281_v29 }
  0xfe   :  { %v252_v32 = vpop.f32.mrb[2].mxu0  ;;  %v284_v33 = vpop.f32.mrb[2].mxu1 }
  0xff   :  { %v254_v34 = vpop.f32.mrb[3].mxu0  ;;  %v286_v35 = vpop.f32.mrb[3].mxu1  ;;  %v253_v47 = vadd.f32 %v349_v42, %v252_v32  ;;  %v285_v48 = vadd.f32 %v349_v42, %v284_v33  ;;  %v312_v55 = vmax.f32 %v250_v45, 0.0  ;;  %v320_v56 = vmax.f32 %v282_v46, 0.0 }
 0x101   :  { %v313_v1 = vmax.f32 %v253_v47, 0.0  ;;  %v321_v2 = vmax.f32 %v285_v48, 0.0 }
 0x104   :  { %v257_v36 = vpop.f32.mrb[4].mxu0  ;;  %v289_v37 = vpop.f32.mrb[4].mxu1 }
 0x105   :  { %v259_v38 = vpop.f32.mrb[5].mxu0  ;;  %v291_v39 = vpop.f32.mrb[5].mxu1  ;;  %v258_v7 = vadd.f32 %v349_v42, %v257_v36  ;;  %v290_v8 = vadd.f32 %v349_v42, %v289_v37 }
 0x106   :  { %v260_v40 = vpop.f32.mrb[6].mxu0  ;;  %v292_v41 = vpop.f32.mrb[6].mxu1 }
 0x107   :  { %v262_v43 = vpop.f32.mrb[7].mxu0  ;;  %v294_v44 = vpop.f32.mrb[7].mxu1  ;;  %v261_v12 = vadd.f32 %v349_v42, %v260_v40  ;;  %v293_v13 = vadd.f32 %v349_v42, %v292_v41  ;;  %v314_v21 = vmax.f32 %v258_v7, 0.0  ;;  %v322_v22 = vmax.f32 %v290_v8, 0.0 }
 0x109   :  { %v315_v31 = vmax.f32 %v261_v12, 0.0  ;;  %v323_v32 = vmax.f32 %v293_v13, 0.0 }
 0x10c   :  { %v265_v49 = vpop.f32.mrb[8].mxu0  ;;  %v297_v50 = vpop.f32.mrb[8].mxu1 }
 0x10d   :  { %v266_v51 = vadd.f32 %v349_v42, %v265_v49  ;;  %v298_v52 = vadd.f32 %v349_v42, %v297_v50  ;;  %v267_v53 = vpop.f32.mrb[9].mxu0  ;;  %v299_v54 = vpop.f32.mrb[9].mxu1 }
 0x10e   :  { %v268_v57 = vpop.f32.mrb[10].mxu0  ;;  %v300_v58 = vpop.f32.mrb[10].mxu1 }
 0x10f   :  { %v316_v59 = vmax.f32 %v266_v51, 0.0  ;;  %v324_v60 = vmax.f32 %v298_v52, 0.0  ;;  %v269_v61 = vadd.f32 %v349_v42, %v268_v57  ;;  %v301_v62 = vadd.f32 %v349_v42, %v300_v58  ;;  %v270_v63 = vpop.f32.mrb[11].mxu0  ;;  %v302_v0 = vpop.f32.mrb[11].mxu1 }
 0x111   :  { %v328_v3 = vmax.f32 %v312_v55, %v316_v59  ;;  %v332_v4 = vmax.f32 %v320_v56, %v324_v60  ;;  %v317_v5 = vmax.f32 %v269_v61, 0.0  ;;  %v325_v6 = vmax.f32 %v301_v62, 0.0 }
 0x113   :  { %v336_v9 = vmax.f32 %v328_v3, %v332_v4  ;;  %v329_v10 = vmax.f32 %v313_v1, %v317_v5  ;;  %v333_v11 = vmax.f32 %v321_v2, %v325_v6 }
 0x114   :  { %v273_v14 = vpop.f32.mrb[12].mxu0  ;;  %v305_v15 = vpop.f32.mrb[12].mxu1 }
 0x115   :  { %341 = vst.msk [vmem:[%s568_s3] sm:$0xff] %vm340_vm2, %v336_v9  ;;  %v337_v16 = vmax.f32 %v329_v10, %v333_v11  ;;  %v274_v17 = vadd.f32 %v349_v42, %v273_v14  ;;  %v306_v18 = vadd.f32 %v349_v42, %v305_v15  ;;  %v275_v19 = vpop.f32.mrb[13].mxu0  ;;  %v307_v20 = vpop.f32.mrb[13].mxu1 }
 0x116   :  { %v276_v23 = vpop.f32.mrb[14].mxu0  ;;  %v308_v24 = vpop.f32.mrb[14].mxu1 }
 0x117   :  { %342 = vst.msk [vmem:[%s568_s3 + $0x8] sm:$0xff] %vm340_vm2, %v337_v16  ;;  %v318_v25 = vmax.f32 %v274_v17, 0.0  ;;  %v326_v26 = vmax.f32 %v306_v18, 0.0  ;;  %v277_v27 = vadd.f32 %v349_v42, %v276_v23  ;;  %v309_v28 = vadd.f32 %v349_v42, %v308_v24  ;;  %v278_v29 = vpop.f32.mrb[15].mxu0  ;;  %v310_v30 = vpop.f32.mrb[15].mxu1 }
 0x119   :  { %v330_v33 = vmax.f32 %v314_v21, %v318_v25  ;;  %v334_v34 = vmax.f32 %v322_v22, %v326_v26  ;;  %v319_v35 = vmax.f32 %v277_v27, 0.0  ;;  %v327_v36 = vmax.f32 %v309_v28, 0.0 }
 0x11b   :  { %v338_v37 = vmax.f32 %v330_v33, %v334_v34  ;;  %v331_v38 = vmax.f32 %v315_v31, %v319_v35  ;;  %v335_v39 = vmax.f32 %v323_v32, %v327_v36 }
 0x11d   :  { %343 = vst.msk [vmem:[%s568_s3 + $0x10] sm:$0xff] %vm340_vm2, %v338_v37  ;;  %v339_v40 = vmax.f32 %v331_v38, %v335_v39 }
 0x11f   :  { %344 = vst.msk [vmem:[%s568_s3 + $0x18] sm:$0xff] %vm340_vm2, %v339_v40 }

// kernel: lenet_forward.5
= control target key start
LH: loop header
LB: loop body
LE: loop exit
PB: predicated region body
PF: predicated region fallthrough
CT: control target
= control target key end

     0   :  { %v618_v2 = vmov 0.0   ;;  %s791_s0 = inlined_call_operand.vmem [shape: f32[2,256], index: 0, kind: input, shape index: {}]   ;;  %s792_s1 = inlined_call_operand.vmem [shape: bf16[256,120], index: 1, kind: input, shape index: {}]   ;;  %s793_s2 = inlined_call_operand.vmem [shape: f32[1,120], index: 2, kind: input, shape index: {}]   ;;  %s794_s3 = inlined_call_operand.vmem [shape: bf16[120,84], index: 3, kind: input, shape index: {}]   ;;  %s795_s4 = inlined_call_operand.vmem [shape: f32[1,84], index: 4, kind: input, shape index: {}]   ;;  %s796_s5 = inlined_call_operand.vmem [shape: bf16[84,10], index: 5, kind: input, shape index: {}]   ;;  %s797_s6 = inlined_call_operand.vmem [shape: f32[1,10], index: 6, kind: input, shape index: {}]   ;;  %s798_s7 = inlined_call_operand.hbm [shape: f32[2,10], index: 7, kind: output, shape index: {}]  }
   0x1   :  { %v564_v0 = vld [vmem:[%s792_s1 + $0x40] sm:$0xff]   ;;  %525 = vmatprep.subr.bf16.mxu1 %v618_v2  ;;  %v566_v3 = vld [vmem:[%s792_s1 + $0x48] sm:$0xff]   ;;  %v568_v5 = vld [vmem:[%s792_s1 + $0x50] sm:$0xff]  }
   0x2   :  { %v565_v1 = vld [vmem:[%s792_s1] sm:$0xff]   ;;  %487 = vmatprep.subr.bf16.mxu0 %v564_v0  ;;  %v567_v4 = vld [vmem:[%s792_s1 + $0x8] sm:$0xff]   ;;  %v569_v6 = vld [vmem:[%s792_s1 + $0x10] sm:$0xff]  }
   0x3   :  { %488 = vmatpush3.bf16.msra.mxu0 %v565_v1  ;;  %v570_v7 = vld [vmem:[%s792_s1 + $0x58] sm:$0xff]   ;;  %v572_v9 = vld [vmem:[%s792_s1 + $0x60] sm:$0xff]   ;;  %v574_v11 = vld [vmem:[%s792_s1 + $0x68] sm:$0xff]  }
   0x4   :  { %489 = vmatprep.subr.bf16.mxu0 %v566_v3  ;;  %v571_v8 = vld [vmem:[%s792_s1 + $0x18] sm:$0xff]   ;;  %v573_v10 = vld [vmem:[%s792_s1 + $0x20] sm:$0xff]   ;;  %v575_v15 = vld [vmem:[%s792_s1 + $0x28] sm:$0xff]  }
   0x5   :  { %v451_v12 = vld.sshfl [vmem:[%s791_s0] sm:$0x33 pattern:$0x76325410]  ;;  %v581_v17 = vld [vmem:[%s794_s3 + $0x8] sm:$0xff]   ;;  %v576_v18 = vld [vmem:[%s792_s1 + $0x70] sm:$0xff]  }
   0x6   :  { %v37_v13 = vcombine.high %v451_v12, %v451_v12  ;;  %v580_v14 = vld [vmem:[%s794_s3] sm:$0xff]   ;;  %v577_v19 = vld [vmem:[%s792_s1 + $0x30] sm:$0xff]   ;;  %v578_v20 = vld [vmem:[%s792_s1 + $0x78] sm:$0xff]  }
   0x7   :  { %490 = vmatpush3.bf16.msra.mxu0 %v567_v4  ;;  %526 = vmatpush3.bf16.msra.mxu1 %v580_v14  ;;  %v582_v21 = vld [vmem:[%s794_s3 + $0x10] sm:$0xff]   ;;  %v579_v22 = vld [vmem:[%s792_s1 + $0x38] sm:$0xff]  }
   0x8   :  { %491 = vmatprep.subr.bf16.mxu0 %v568_v5  ;;  %v41_v16 = vpack.c.bf16 %v37_v13, %v37_v13  ;;  %527 = vmatprep.subr.bf16.mxu1 %v618_v2  ;;  %v583_v23 = vld [vmem:[%s794_s3 + $0x18] sm:$0xff]  }
   0xa   :  { %209 = vmatprep.mubr.bf16.mxu0 %v41_v16 }
   0xb   :  { %492 = vmatpush3.bf16.msra.mxu0 %v569_v6  ;;  %528 = vmatpush3.bf16.msra.mxu1 %v581_v17 }
   0xc   :  { %493 = vmatprep.subr.bf16.mxu0 %v570_v7  ;;  %529 = vmatprep.subr.bf16.mxu1 %v618_v2 }
   0xf   :  { %494 = vmatpush3.bf16.msra.mxu0 %v571_v8  ;;  %530 = vmatpush3.bf16.msra.mxu1 %v582_v21 }
  0x10   :  { %495 = vmatprep.subr.bf16.mxu0 %v572_v9 }
  0x13   :  { %496 = vmatpush3.bf16.msra.mxu0 %v573_v10 }
  0x14   :  { %497 = vmatprep.subr.bf16.mxu0 %v574_v11 }
  0x17   :  { %498 = vmatpush3.bf16.msra.mxu0 %v575_v15 }
  0x18   :  { %499 = vmatprep.subr.bf16.mxu0 %v576_v18 }
  0x1b   :  { %500 = vmatpush3.bf16.msra.mxu0 %v577_v19 }
  0x1c   :  { %12 = vsyncpa [#allocation3], 0  ;;  %501 = vmatprep.subr.bf16.mxu0 %v578_v20  ;;  %531 = vmatprep.subr.bf16.mxu1 %v618_v2  ;;  %v40_v24 = vpack.c.bf16 %v451_v12, %v451_v12  ;;  %v584_v25 = vld [vmem:[%s794_s3 + $0x20] sm:$0xff]   ;;  %v585_v26 = vld [vmem:[%s794_s3 + $0x28] sm:$0xff]   ;;  %vm290_vm0 = vcmask 1043456   ;;  %vm619_vm1 = vmmov 0  }
  0x1d   :  { %532 = vmatpush3.bf16.msra.mxu1 %v583_v23  ;;  %v586_v27 = vld [vmem:[%s794_s3 + $0x30] sm:$0xff]   ;;  %v587_v28 = vld [vmem:[%s794_s3 + $0x38] ss:$0 sps:$4 sm:$0xff]   ;;  %541 = vmatprep.mubr.msk.bf16.mxu1 %vm619_vm1, %v618_v2  ;;  %v588_v30 = vld [vmem:[%s796_s5] sm:$0xff]   ;;  %vm286_vm2 = vcmask 982016   ;;  %vm391_vm3 = vcmask 1041408  }
  0x1e   :  { %533 = vmatprep.subr.bf16.mxu1 %v618_v2  ;;  %v292_v29 = vsel %vm290_vm0, %v587_v28, 0  ;;  %v589_v31 = vld [vmem:[%s796_s5 + $0x8] sm:$0xff]   ;;  %v590_v32 = vld [vmem:[%s796_s5 + $0x10] sm:$0xff]   ;;  %v591_v33 = vld [vmem:[%s796_s5 + $0x18] sm:$0xff]   ;;  %vm387_vm4 = vcmask 687104   ;;  %vm435_vm5 = vcmask 74752  }
  0x1f   :  { %502 = vmatpush3.bf16.msra.mxu0 %v579_v22  ;;  %v452_v35 = vld [vmem:[%s793_s2] ss:$0 sm:$0xff]  ;;  %v593_v44 = vld [vmem:[%s796_s5 + $0x28] ss:$0 sps:$4 sm:$0x33]  }
  0x20   :  { %545 = vmatprep.subr.bf16.mxu0 %v618_v2  ;;  %v592_v43 = vld [vmem:[%s796_s5 + $0x20] sm:$0xff]   ;;  %v393_v45 = vsel %vm391_vm3, %v593_v44, 0  ;;  %s620_s5 = smov [#allocation2]  }
  0x21   :  { %534 = vmatpush3.bf16.msra.mxu1 %v584_v25  ;;  %v469_v46 = vld [vmem:[%s795_s4] ss:$0 sm:$0xff]  ;;  %s443_s18 = sshll.u32 %s620_s5, 4  ;;  %s444_s18 = int_to_ptr.vmem [resolvable:$true] %s443_s18 }
  0x22   :  { %210 = vmatmul.mubr.bf16.vlgmr.msra.gmra.mrb[0].mxu0 %v40_v24  ;;  %535 = vmatprep.subr.bf16.mxu1 %v618_v2  ;;  %v479_v54 = vld [vmem:[%s797_s6] ss:$0 sm:$0xff]  ;;  %s594_s4 = scalar_lea.vmem %s444_s18, 32  ;;  %p599_p1 = scmp.lt.s32.totalorder %s444_s18, %s444_s18 }
  0x23   :  { %557 = vmatprep.mubr.msk.bf16.mxu0 %vm619_vm1, %v618_v2  ;;  %546 = vmatpush3.bf16.msra.mxu0 %v588_v30  ;;  %p595_p0 = scmp.ne.s32.totalorder %s444_s18, %s594_s4  ;;  %p600_p2 = scmp.lt.s32.totalorder %s594_s4, %s594_s4 }
  0x24   :  { %547 = vmatprep.subr.bf16.mxu0 %v618_v2 }
  0x25   :  { %536 = vmatpush3.bf16.msra.mxu1 %v585_v26  ;;  %p601_p3 = por %p600_p2, %p599_p1 }
  0x26   :  { %537 = vmatprep.subr.bf16.mxu1 %v618_v2 }
  0x27   :  { %548 = vmatpush3.bf16.msra.mxu0 %v589_v31  ;;  %p602_p4 = pnand %p601_p3, %p595_p0 }
  0x28   :  { %549 = vmatprep.subr.bf16.mxu0 %v618_v2 }
  0x29   :  { %538 = vmatpush3.bf16.msra.mxu1 %v586_v27 }
  0x2a   :  { %539 = vmatprep.subr.bf16.mxu1 %v618_v2 }
  0x2b   :  { %550 = vmatpush3.bf16.msra.mxu0 %v590_v32 }
  0x2c   :  { %551 = vmatprep.subr.bf16.mxu0 %v618_v2 }
  0x2d   :  { %540 = vmatpush3.bf16.msra.mxu1 %v292_v29 }
  0x2f   :  { %552 = vmatpush3.bf16.msra.mxu0 %v591_v33 }
  0x30   :  { %553 = vmatprep.subr.bf16.mxu0 %v618_v2 }
  0x33   :  { %554 = vmatpush3.bf16.msra.mxu0 %v592_v43 }
  0x34   :  { %555 = vmatprep.subr.bf16.mxu0 %v618_v2 }
  0x37   :  { %556 = vmatpush3.bf16.msra.mxu0 %v393_v45 }
  0xf5   :  { %v503_v34 = vpop.f32.mrb[0].mxu0 }
  0xf6   :  { %v504_v36 = vpop.f32.mrb[1].mxu0 }
  0xf7   :  { %v505_v37 = vadd.f32 %v504_v36, %v503_v34  ;;  %v506_v38 = vpop.f32.mrb[2].mxu0 }
  0xf8   :  { %v507_v39 = vpop.f32.mrb[3].mxu0 }
  0xf9   :  { %v212_v40 = vadd.f32 %v505_v37, %v452_v35 }
  0xfb   :  { %v217_v41 = vmax.f32 %v212_v40, 0.0 }
  0xfd   :  { %v218_v42 = vpack.c.bf16 %v217_v41, %v217_v41 }
  0xff   :  { %542 = vmatmul.mubr.msk.bf16.vlgmr.msra.gmra.mrb[0].mxu1 %vm286_vm2, %v218_v42 }
 0x1d2   :  { %v328_v47 = vpop.f32.mrb[0].mxu1 }
 0x1d3   :  { %v329_v48 = vadd.f32 %v469_v46, %v328_v47  ;;  %v543_v49 = vpop.f32.mrb[1].mxu1 }
 0x1d4   :  { %v331_v50 = vpop.f32.mrb[2].mxu1 }
 0x1d5   :  { %v334_v51 = vmax.f32 %v329_v48, 0.0  ;;  %v544_v52 = vpop.f32.mrb[3].mxu1 }
 0x1d7   :  { %v335_v53 = vpack.c.bf16 %v334_v51, %v334_v51 }
 0x1d9   :  { %558 = vmatmul.mubr.msk.bf16.vlgmr.msra.gmra.mrb[4].mxu0 %vm387_vm4, %v335_v53 }
 0x2ac   :  { %v429_v55 = vpop.f32.mrb[4].mxu0 }
 0x2ad   :  { %v430_v56 = vadd.f32 %v479_v54, %v429_v55  ;;  %v559_v57 = vpop.f32.mrb[5].mxu0 }
 0x2ae   :  { %v432_v58 = vpop.f32.mrb[6].mxu0 }
 0x2af   :  { %v560_v59 = vpop.f32.mrb[7].mxu0  ;;  %436 = vst.msk [vmem:[#allocation2] sm:$0x3] %vm435_vm5, %v430_v56 }
 0x2b0   :  { %605 = shalt.err (!%p602_p4)
}
 0x2b1   :  { %s606_s6 = scalar_lea.hbm %s798_s7, 32 }
 0x2b2   :  { %p607_p5 = scmp.ne.s32.totalorder %s798_s7, %s606_s6  ;;  %p610_p6 = scmp.lt.u32.totalorder %s606_s6, %s798_s7 }
 0x2b4   :  { %p612_p7 = pnand %p610_p6, %p607_p5 }
 0x2b6   :  { %615 = shalt.err (!%p612_p7)
}
 0x2b7   :  { %446 = dma.vmem_to_hbm [thread:$0]  %s444_s18, 32, %s798_s7, [#allocation3]  }
 0x2b8   :  { %616 = dma.done.wait [#allocation3], 32  }
 0x2b9   :  { %617 = vsyncadd [#allocation3], 4294967264 }
 0x2ba   :  { %450 = vsyncpa [#allocation3], 1 }

</bundles_post_ra>
